<compile_context>
chip_gen: v7x
topology: tpu7x:2x2x1
jax: 0.10.0
libtpu: 0.0.40
codegen_flags: <defaults>
</compile_context>

<pallas_src>
import math

import jax
import jax.numpy as jnp
from jax.experimental import pallas as pl
from jax.experimental.pallas import tpu as pltpu

LOG_SQRT_2PI = 0.5 * math.log(2.0 * math.pi)
INV_SQRT_2PI = math.exp(-LOG_SQRT_2PI)      # pad sigma -> exactly 0 contribution


def _round_up(a, b):
    return ((a + b - 1) // b) * b


# -----------------------------------------------------------------------------
# Pallas kernel
# -----------------------------------------------------------------------------
def _make_vi_dann_kernel(Dw, Dz, hp, conditional):
    """Hyper-parameters / sizes are Python scalars baked into the closure."""
    bx = float(hp["bx"]); bw = float(hp["bw"]); bz = float(hp["bz"])
    bhw = float(hp["bhw"]); bhz = float(hp["bhz"]); byw = float(hp["byw"])
    Dw = int(Dw); Dz = int(Dz); Dl = Dw + Dz

    def _log_sigmoid(t):
        # stable log(sigmoid(t)); avoids log(0) when a head saturates
        return jnp.minimum(t, 0.0) - jnp.log(1.0 + jnp.exp(-jnp.abs(t)))

    def kernel(x_ref, mupx_ref, sigpx_ref,      # (tile_n, dx_tile) image blocks
               val_ref, mu_ref, sig_ref,        # packed latent slabs
               vec_ref, par_ref,                # per-sample vec + params
               diag_ref,                        # (tile_n, 10) output slab
               logpx_acc):                      # (tile_n, 1) VMEM scratch
        j = pl.program_id(1)                    # feature-tile index (reduction)

        # ---- streaming log p(x | w, z) over feature tiles (f32 accumulate) ----
        x = x_ref[...].astype(jnp.float32)
        mu_px = mupx_ref[...].astype(jnp.float32)
        sig_px = sigpx_ref[...]                 # always f32
        u = (x - mu_px) / sig_px
        contrib = jnp.sum(-0.5 * u * u - jnp.log(sig_px) - LOG_SQRT_2PI,
                          axis=1, keepdims=True)            # (tile_n, 1)

        @pl.when(j == 0)
        def _():
            logpx_acc[...] = contrib

        @pl.when(j != 0)
        def _():
            logpx_acc[...] = logpx_acc[...] + contrib

        # ---- latent log-probs / heads / diagnostics only on last dx step ----
        @pl.when(j == pl.num_programs(1) - 1)
        def _():
            log_px = logpx_acc[...]

            vals = val_ref[...]                 # (tile_n, Dl) = [w | z]
            mus = mu_ref[...]                   # [mu_pw|mu_pz | mu_qw|mu_qz]
            sigs = sig_ref[...]
            up = (vals - mus[:, :Dl]) / sigs[:, :Dl]
            uq = (vals - mus[:, Dl:]) / sigs[:, Dl:]
            lp_p = -0.5 * up * up - jnp.log(sigs[:, :Dl]) - LOG_SQRT_2PI
            lp_q = -0.5 * uq * uq - jnp.log(sigs[:, Dl:]) - LOG_SQRT_2PI
            log_pw = jnp.sum(lp_p[:, :Dw], axis=1, keepdims=True)
            log_pz = jnp.sum(lp_p[:, Dw:], axis=1, keepdims=True)
            log_qw = jnp.sum(lp_q[:, :Dw], axis=1, keepdims=True)
            log_qz = jnp.sum(lp_q[:, Dw:], axis=1, keepdims=True)

            w = vals[:, :Dw]
            z = vals[:, Dw:]

            vec = vec_ref[...]                  # (tile_n, 8)
            yv = vec[:, 0:1]
            cv = vec[:, 1:2]
            qy_logit = vec[:, 2:3]

            par = par_ref[...]                  # (8, Kp)
            cls_e0 = par[0:1, :Dw]; cls_e1 = par[1:2, :Dw]
            col_e0 = par[2:3, :Dz]; col_e1 = par[3:4, :Dz]
            auxy_w = par[4:5, :Dz]; auxc_w = par[5:6, :Dw]
            auxy_b = par[6:7, 0:1]; auxc_b = par[6:7, 1:2]

            # q(y | w) Bernoulli (logit parameterization)
            log_qyw = (yv * _log_sigmoid(qy_logit)
                       + (1.0 - yv) * _log_sigmoid(-qy_logit))
            kl_w = log_qw - log_pw
            kl_z = log_qz - log_pz
            m1 = -bx * log_px + bw * kl_w + bz * kl_z - byw * log_qyw

            # (conditional) adversarial heads; exact {0,1} embedding blend
            if conditional:                     # trace-time branch
                z_in = z + (cv * col_e1 + (1.0 - cv) * col_e0)
                w_in = w + (yv * cls_e1 + (1.0 - yv) * cls_e0)
            else:
                z_in, w_in = z, w

            logit_y = jnp.sum(z_in * auxy_w, axis=1, keepdims=True) + auxy_b
            log_qyz = (yv * _log_sigmoid(logit_y)
                       + (1.0 - yv) * _log_sigmoid(-logit_y))
            logit_c = jnp.sum(w_in * auxc_w, axis=1, keepdims=True) + auxc_b
            log_qc = (cv * _log_sigmoid(logit_c)
                      + (1.0 - cv) * _log_sigmoid(-logit_c))

            m = m1 + bhz * log_qyz + bhw * log_qc

            # single consolidated per-sample slab (one output stream)
            diag_ref[...] = jnp.concatenate(
                [m1, log_px, kl_w, kl_z,
                 jnp.exp(log_qyz), jnp.exp(log_qc),
                 m, log_qyw, log_qyz, log_qc], axis=1)

    return kernel


# -----------------------------------------------------------------------------
# Wrapper (glue) around pallas_call
# -----------------------------------------------------------------------------
def vi_dann_forward(x, y, c, model_outputs, aux_params, hp, conditional,
                    *, tile_n=None, dx_tile=None,
                    image_stream_dtype=jnp.float32):
    """Pallas implementation of VI_DANN.forward given model / aux-head outputs.

    image_stream_dtype=jnp.bfloat16 halves HBM bytes of the dominant streams
    (recommended on v6e/v7x); sigma is always shipped f32 for accuracy.
    """
    N = x.shape[0]
    x_flat = x.reshape(N, -1)
    Dx = x_flat.shape[1]

    (mu_px, sig_px, w, mu_pw, sig_pw, mu_qw, sig_qw,
     z, mu_pz, sig_pz, mu_qz, sig_qz, qy_logit) = model_outputs
    Dw = w.shape[1]
    Dz = z.shape[1]
    Dl = Dw + Dz
    Kp = max(Dw, Dz, 2)

    f32 = jnp.float32
    img_dt = jnp.dtype(image_stream_dtype)
    img_bpe = img_dt.itemsize

    # ---- tile selection (bounds resident VMEM independent of N / image size) ----
    if dx_tile is None:
        dx_tile = min(_round_up(Dx, 128), 2048)
    dx_tile = max(128, _round_up(int(dx_tile), 128))
    Dx_pad = _round_up(Dx, dx_tile)
    grid_dx = Dx_pad // dx_tile

    row_align = 16 if img_bpe < 4 else 8        # bf16 packs 2 rows / sublane
    if tile_n is None:
        # target ~24 MiB of double-buffered image inputs per grid step
        bytes_per_row = dx_tile * (2 * img_bpe + 4)
        tile_n = max(row_align, min(1024, (12 * 2 ** 20) // max(1, bytes_per_row)))
    tile_n = max(row_align, _round_up(int(tile_n), row_align))
    tile_n = min(tile_n, _round_up(N, row_align))
    N_pad = _round_up(N, tile_n)
    grid_n = N_pad // tile_n

    # ---- pack inputs (no copies when shapes / dtypes already align) ----
    def pad_2d(a, dtype, fill, n_cols):
        a = a.astype(dtype)
        r, k = a.shape
        if n_cols > k:
            a = jnp.concatenate(
                [a, jnp.full((r, n_cols - k), fill, dtype)], axis=1)
        if N_pad > r:
            a = jnp.concatenate(
                [a, jnp.full((N_pad - r, n_cols), fill, dtype)], axis=0)
        return a

    xs = pad_2d(x_flat, img_dt, 0.0, Dx_pad)
    mups = pad_2d(mu_px, img_dt, 0.0, Dx_pad)
    sips = pad_2d(sig_px, f32, INV_SQRT_2PI, Dx_pad)       # sigma stays f32

    # latent slabs: values once, mu/sigma laid out [p-half | q-half]
    val_slab = pad_2d(jnp.concatenate([w, z], axis=1).astype(f32), f32, 0.0, Dl)
    mu_slab = pad_2d(
        jnp.concatenate([mu_pw, mu_pz, mu_qw, mu_qz], axis=1).astype(f32),
        f32, 0.0, 2 * Dl)
    sig_slab = pad_2d(
        jnp.concatenate([sig_pw, sig_pz, sig_qw, sig_qz], axis=1).astype(f32),
        f32, 1.0, 2 * Dl)

    # per-sample vector slab: [y, c, qy_logit, 0, 0, 0, 0, 0]
    vec = jnp.concatenate(
        [y.reshape(N, 1).astype(f32), c.reshape(N, 1).astype(f32),
         qy_logit.reshape(N, 1).astype(f32), jnp.zeros((N, 5), f32)], axis=1)
    vec = pad_2d(vec, f32, 0.0, 8)

    # parameter slab (embedding tables + aux heads): (8, Kp)
    def _row(v):
        v = jnp.asarray(v, f32).reshape(1, -1)
        return jnp.pad(v, ((0, 0), (0, Kp - v.shape[1])))

    par = jnp.concatenate([
        _row(aux_params["class_emb"][0]), _row(aux_params["class_emb"][1]),
        _row(aux_params["color_emb"][0]), _row(aux_params["color_emb"][1]),
        _row(aux_params["Wy"]), _row(aux_params["Wc"]),
        _row(jnp.stack([jnp.asarray(aux_params["by"], f32).reshape(()),
                        jnp.asarray(aux_params["bc"], f32).reshape(())])),
        jnp.zeros((1, Kp), f32)], axis=0)

    kernel = _make_vi_dann_kernel(Dw, Dz, hp, conditional)

    img_spec = pl.BlockSpec((tile_n, dx_tile), lambda i, j: (i, j))

    def row_spec(width):
        return pl.BlockSpec((tile_n, width), lambda i, j: (i, 0))

    grid_spec = pltpu.PrefetchScalarGridSpec(
        num_scalar_prefetch=0,
        grid=(grid_n, grid_dx),
        in_specs=[
            img_spec, img_spec, img_spec,                 # x, mu_px, sig_px
            row_spec(Dl), row_spec(2 * Dl), row_spec(2 * Dl),
            row_spec(8),
            pl.BlockSpec((8, Kp), lambda i, j: (0, 0)),
        ],
        out_specs=pl.BlockSpec((tile_n, 10), lambda i, j: (i, 0)),
        scratch_shapes=[pltpu.VMEM((tile_n, 1), jnp.float32)],
    )

    # scoped-VMEM sized to the resident set; 56 MiB cap is safe on v7x (64 MiB
    # physical) and harmless on v5e/v6e.
    block_bytes = (2 * tile_n * dx_tile * img_bpe
                   + tile_n * dx_tile * 4
                   + tile_n * (5 * Dl + 8 + 10) * 4
                   + 8 * Kp * 4
                   + tile_n * 128 * 4)
    vmem_limit = int(min(56 * 2 ** 20, max(16 * 2 ** 20, 3 * block_bytes)))

    img_bytes = (2 * img_bpe + 4) * N_pad * Dx_pad
    other_bytes = 4 * (N_pad * (5 * Dl + 8 + 10) + 8 * Kp)
    cost = pl.CostEstimate(
        flops=int(8 * N_pad * Dx_pad + 30 * N_pad * Dl + 80 * N_pad),
        transcendentals=int(N_pad * Dx_pad + 2 * N_pad * Dl + 8 * N_pad),
        bytes_accessed=int(img_bytes + other_bytes))

    diag_pad = pl.pallas_call(
        kernel,
        out_shape=jax.ShapeDtypeStruct((N_pad, 10), jnp.float32),
        grid_spec=grid_spec,
        compiler_params=pltpu.CompilerParams(
            dimension_semantics=("parallel", "arbitrary"),
            vmem_limit_bytes=vmem_limit),
        cost_estimate=cost,
    )(xs, mups, sips, val_slab, mu_slab, sig_slab, vec, par)

    diag = diag_pad[:N]
    # scalar losses: tiny (N,)-means done in plain JAX (.detach() is
    # forward-identity, so aux losses reuse the same forward log-probs)
    csvae_loss = jnp.mean(diag[:, 6])
    aux_y_loss = -float(hp["byz"]) * jnp.mean(diag[:, 8])
    aux_c_loss = -float(hp["bc"]) * jnp.mean(diag[:, 9])
    diagnostics = {
        "m1": diag[:, 0], "log_px": diag[:, 1], "kl_w": diag[:, 2],
        "kl_z": diag[:, 3], "qy": diag[:, 4], "qc": diag[:, 5],
        "m": diag[:, 6], "log_qy": diag[:, 7],
    }
    return csvae_loss, aux_y_loss, aux_c_loss, diagnostics


# -----------------------------------------------------------------------------
# Synthetic "model", aux heads, embeddings (deterministic params) — plain-JAX
# glue standing in for the nn.Module arguments of VI_DANN.forward.
# -----------------------------------------------------------------------------
def build_modules(key, Dx, H, Dw, Dz):
    ks = jax.random.split(key, 10)
    s = 0.3
    nrm = lambda k, shp: s * jax.random.normal(k, shp, jnp.float32)
    model = dict(
        W_enc=nrm(ks[0], (Dx, H)),
        W_qw=nrm(ks[1], (H, 2 * Dw)),
        W_qz=nrm(ks[2], (H, 2 * Dz)),
        W_pw=nrm(ks[3], (1, 2 * Dw)),
        W_dec=nrm(ks[4], (Dw + Dz, Dx)),
        W_qy=nrm(ks[5], (Dw, 1)),
    )
    aux = dict(
        class_emb=nrm(ks[6], (2, Dw)),
        color_emb=nrm(ks[7], (2, Dz)),
        Wy=nrm(ks[8], (Dz,)),
        by=jnp.float32(0.1),
        Wc=nrm(ks[9], (Dw,)),
        bc=jnp.float32(-0.1),
    )
    return model, aux


def synthetic_model(params, x, y, eps_key):
    """Gaussian CSVAE 'model(x, y)': Normals as (mu, sigma), q(y|w) as a logit,
    plus reparameterized samples w, z."""
    N = x.shape[0]
    x_flat = x.reshape(N, -1)
    h = jnp.tanh(x_flat @ params["W_enc"])

    mu_qw, ls_qw = jnp.split(h @ params["W_qw"], 2, axis=1)
    sig_qw = jnp.exp(0.5 * ls_qw)
    mu_qz, ls_qz = jnp.split(h @ params["W_qz"], 2, axis=1)
    sig_qz = jnp.exp(0.5 * ls_qz)

    k1, k2 = jax.random.split(eps_key)
    w = mu_qw + sig_qw * jax.random.normal(k1, mu_qw.shape, jnp.float32)
    z = mu_qz + sig_qz * jax.random.normal(k2, mu_qz.shape, jnp.float32)

    mu_pw, ls_pw = jnp.split(y.reshape(N, 1) @ params["W_pw"], 2, axis=1)
    sig_pw = jnp.exp(0.5 * ls_pw)
    mu_pz = jnp.zeros_like(z)
    sig_pz = jnp.ones_like(z)

    mu_px = jnp.tanh(jnp.concatenate([w, z], axis=1) @ params["W_dec"])
    sig_px = jnp.full_like(x_flat, 0.5)

    qy_logit = w @ params["W_qy"]                 # (N, 1)

    return (mu_px, sig_px, w, mu_pw, sig_pw, mu_qw, sig_qw,
            z, mu_pz, sig_pz, mu_qz, sig_qz, qy_logit)


# -----------------------------------------------------------------------------
# Pure-JAX reference (mirrors the PyTorch forward)
# -----------------------------------------------------------------------------
def _log_sigmoid_ref(t):
    return jnp.minimum(t, 0.0) - jnp.log(1.0 + jnp.exp(-jnp.abs(t)))


def reference_forward(x, y, c, model_outputs, aux, hp, conditional):
    N = x.shape[0]
    x_flat = x.reshape(N, -1)
    (mu_px, sig_px, w, mu_pw, sig_pw, mu_qw, sig_qw,
     z, mu_pz, sig_pz, mu_qz, sig_qz, qy_logit) = model_outputs

    def nlp(v, mu, sig):
        u = (v - mu) / sig
        return jnp.sum(-0.5 * u * u - jnp.log(sig) - LOG_SQRT_2PI, axis=1)

    log_px = nlp(x_flat, mu_px, sig_px)
    log_pw = nlp(w, mu_pw, sig_pw)
    log_pz = nlp(z, mu_pz, sig_pz)
    log_qw = nlp(w, mu_qw, sig_qw)
    log_qz = nlp(z, mu_qz, sig_qz)

    yv = y.reshape(N, 1)
    log_qyw = (yv * _log_sigmoid_ref(qy_logit)
               + (1.0 - yv) * _log_sigmoid_ref(-qy_logit))[:, 0]

    kl_w = log_qw - log_pw
    kl_z = log_qz - log_pz
    m1 = (-hp["bx"] * log_px + hp["bw"] * kl_w + hp["bz"] * kl_z
          - hp["byw"] * log_qyw)

    if conditional:
        z_input = z + aux["color_emb"][c.astype(jnp.int32)]
        w_input = w + aux["class_emb"][y.astype(jnp.int32)]
    else:
        z_input, w_input = z, w

    logit_y = z_input @ aux["Wy"] + aux["by"]
    log_qyz = y * _log_sigmoid_ref(logit_y) + (1.0 - y) * _log_sigmoid_ref(-logit_y)
    m2 = hp["bhz"] * log_qyz

    logit_c = w_input @ aux["Wc"] + aux["bc"]
    log_qc = c * _log_sigmoid_ref(logit_c) + (1.0 - c) * _log_sigmoid_ref(-logit_c)
    m3 = hp["bhw"] * log_qc

    m = m1 + m2 + m3
    csvae_loss = m.mean()
    aux_y_loss = -(hp["byz"] * log_qyz).mean()    # .detach() is forward-identity
    aux_c_loss = -(hp["bc"] * log_qc).mean()
    diagnostics = dict(m1=m1, log_px=log_px, kl_w=kl_w, kl_z=kl_z,
                       qy=jnp.exp(log_qyz), qc=jnp.exp(log_qc), m=m,
                       log_qy=log_qyw)
    return csvae_loss, aux_y_loss, aux_c_loss, diagnostics


# -----------------------------------------------------------------------------
if __name__ == "__main__":
    key = jax.random.PRNGKey(0)
    kx, kp, ke = jax.random.split(key, 3)

    # small shapes: batch=16 images of (1, 16, 16); latents Dw = Dz = 8; hidden 32
    N, C, Hs, Ws = 16, 1, 16, 16
    Dx, Hh, Dw, Dz = C * Hs * Ws, 32, 8, 8

    x = jax.random.normal(kx, (N, C, Hs, Ws), jnp.float32)
    y = jnp.array([0, 0, 0, 0, 0, 0, 0, 0, 1, 1, 1, 1, 1, 1, 1, 1], jnp.float32)
    c = jnp.array([0, 0, 1, 1, 0, 0, 1, 1, 0, 0, 1, 1, 0, 0, 1, 1], jnp.float32)

    hp = dict(bx=1.0, bw=1.0, bz=1.0, bhw=10.0, bhz=10.0,
              byw=1.0, byz=1.0, bc=1.0)
    conditional = True

    model_params, aux_params = build_modules(kp, Dx, Hh, Dw, Dz)
    model_outputs = synthetic_model(model_params, x, y, ke)

    # tile_n=8, dx_tile=128 -> grid (2, 2): exercises batch tiling AND the
    # streaming log_px accumulation over feature tiles.
    csvae, ay_loss, ac_loss, diag = vi_dann_forward(
        x, y, c, model_outputs, aux_params, hp, conditional,
        tile_n=8, dx_tile=128, image_stream_dtype=jnp.float32)
    csvae = jax.block_until_ready(csvae)

    r_csvae, r_ay, r_ac, r_diag = reference_forward(
        x, y, c, model_outputs, aux_params, hp, conditional)

    for name, got, ref in [("csvaeLoss", csvae, r_csvae),
                           ("aux_y_loss", ay_loss, r_ay),
                           ("aux_c_loss", ac_loss, r_ac)]:
        assert jnp.isfinite(got), f"{name} is non-finite"
        assert jnp.allclose(got, ref, rtol=1e-3, atol=1e-3), (
            f"{name} mismatch: pallas={float(got)} ref={float(ref)}")
    for k in ("m1", "log_px", "kl_w", "kl_z", "qy", "qc", "m", "log_qy"):
        assert jnp.allclose(diag[k], r_diag[k], rtol=1e-3, atol=1e-3), (
            f"diagnostic '{k}' mismatch")

    print("KERNEL_OK")
</pallas_src>

<mosaic_0001>
module attributes {stable_mosaic.version = 11 : i64} {
  func.func @kernel(%arg0: i32, %arg1: i32, %arg2: memref<8x128xf32, #tpu.memory_space<vmem>>, %arg3: memref<8x128xf32, #tpu.memory_space<vmem>>, %arg4: memref<8x128xf32, #tpu.memory_space<vmem>>, %arg5: memref<8x16xf32, #tpu.memory_space<vmem>>, %arg6: memref<8x32xf32, #tpu.memory_space<vmem>>, %arg7: memref<8x32xf32, #tpu.memory_space<vmem>>, %arg8: memref<8x8xf32, #tpu.memory_space<vmem>>, %arg9: memref<8x8xf32, #tpu.memory_space<vmem>>, %arg10: memref<8x10xf32, #tpu.memory_space<vmem>>, %arg11: memref<8x1xf32, #tpu.memory_space<vmem>>) attributes {dimension_semantics = [#tpu.dimension_semantics<parallel>, #tpu.dimension_semantics<arbitrary>], iteration_bounds = array<i64: 2, 2>, scalar_prefetch = 0 : i64, scratch_operands = 1 : i64, tpu.core_type = #tpu.core_type<tc>, window_params = [{transform_indices = @transform_0, window_bounds = array<i64: 8, 128>}, {transform_indices = @transform_1, window_bounds = array<i64: 8, 128>}, {transform_indices = @transform_2, window_bounds = array<i64: 8, 128>}, {transform_indices = @transform_3, window_bounds = array<i64: 8, 16>}, {transform_indices = @transform_4, window_bounds = array<i64: 8, 32>}, {transform_indices = @transform_5, window_bounds = array<i64: 8, 32>}, {transform_indices = @transform_6, window_bounds = array<i64: 8, 8>}, {pipeline_mode = #tpu.pipeline_mode<synchronous>, transform_indices = @transform_7, window_bounds = array<i64: 8, 8>}, {transform_indices = @transform_8, window_bounds = array<i64: 8, 10>}]} {
    %c0 = arith.constant 0 : index
    %c0_0 = arith.constant 0 : index
    %0 = vector.load %arg2[%c0, %c0_0] : memref<8x128xf32, #tpu.memory_space<vmem>>, vector<8x128xf32>
    %c0_1 = arith.constant 0 : index
    %c0_2 = arith.constant 0 : index
    %1 = vector.load %arg3[%c0_1, %c0_2] : memref<8x128xf32, #tpu.memory_space<vmem>>, vector<8x128xf32>
    %c0_3 = arith.constant 0 : index
    %c0_4 = arith.constant 0 : index
    %2 = vector.load %arg4[%c0_3, %c0_4] : memref<8x128xf32, #tpu.memory_space<vmem>>, vector<8x128xf32>
    %3 = arith.subf %0, %1 : vector<8x128xf32>
    %4 = arith.divf %3, %2 : vector<8x128xf32>
    %cst = arith.constant -5.000000e-01 : f32
    %5 = vector.broadcast %cst : f32 to vector<8x128xf32>
    %6 = arith.mulf %5, %4 : vector<8x128xf32>
    %7 = arith.mulf %6, %4 : vector<8x128xf32>
    %8 = math.log %2 : vector<8x128xf32>
    %9 = arith.subf %7, %8 : vector<8x128xf32>
    %cst_5 = arith.constant 0.918938517 : f32
    %10 = vector.broadcast %cst_5 : f32 to vector<8x128xf32>
    %11 = arith.subf %9, %10 : vector<8x128xf32>
    %cst_6 = arith.constant dense<0.000000e+00> : vector<8xf32>
    %12 = vector.multi_reduction <add>, %11, %cst_6 [1] : vector<8x128xf32> to vector<8xf32>
    %13 = vector.shape_cast %12 : vector<8xf32> to vector<8x1xf32>
    %c0_i32 = arith.constant 0 : i32
    %14 = arith.cmpi eq, %arg1, %c0_i32 : i32
    %15 = arith.extui %14 : i1 to i32
    %c0_i32_7 = arith.constant 0 : i32
    %16 = arith.cmpi ne, %15, %c0_i32_7 : i32
    scf.if %16 {
      %c0_11 = arith.constant 0 : index
      %c0_12 = arith.constant 0 : index
      %23 = vector.load %arg11[%c0_11, %c0_12] : memref<8x1xf32, #tpu.memory_space<vmem>>, vector<8x1xf32>
      tpu.vector_store %arg11[%c0_11, %c0_12], %13 {strides = array<i32>} : memref<8x1xf32, #tpu.memory_space<vmem>>, vector<8x1xf32>,
    } else {
    }
    %c0_i32_8 = arith.constant 0 : i32
    %17 = arith.cmpi ne, %arg1, %c0_i32_8 : i32
    %18 = arith.extui %17 : i1 to i32
    %c0_i32_9 = arith.constant 0 : i32
    %19 = arith.cmpi ne, %18, %c0_i32_9 : i32
    scf.if %19 {
      %c0_11 = arith.constant 0 : index
      %c0_12 = arith.constant 0 : index
      %23 = vector.load %arg11[%c0_11, %c0_12] : memref<8x1xf32, #tpu.memory_space<vmem>>, vector<8x1xf32>
      %24 = arith.addf %23, %13 : vector<8x1xf32>
      %c0_13 = arith.constant 0 : index
      %c0_14 = arith.constant 0 : index
      %25 = vector.load %arg11[%c0_13, %c0_14] : memref<8x1xf32, #tpu.memory_space<vmem>>, vector<8x1xf32>
      tpu.vector_store %arg11[%c0_13, %c0_14], %24 {strides = array<i32>} : memref<8x1xf32, #tpu.memory_space<vmem>>, vector<8x1xf32>,
    } else {
    }
    %c1_i32 = arith.constant 1 : i32
    %20 = arith.cmpi eq, %arg1, %c1_i32 : i32
    %21 = arith.extui %20 : i1 to i32
    %c0_i32_10 = arith.constant 0 : i32
    %22 = arith.cmpi ne, %21, %c0_i32_10 : i32
    scf.if %22 {
      %c0_11 = arith.constant 0 : index
      %c0_12 = arith.constant 0 : index
      %23 = vector.load %arg11[%c0_11, %c0_12] : memref<8x1xf32, #tpu.memory_space<vmem>>, vector<8x1xf32>
      %c0_13 = arith.constant 0 : index
      %c0_14 = arith.constant 0 : index
      %24 = vector.load %arg5[%c0_13, %c0_14] : memref<8x16xf32, #tpu.memory_space<vmem>>, vector<8x16xf32>
      %c0_15 = arith.constant 0 : index
      %c0_16 = arith.constant 0 : index
      %25 = vector.load %arg6[%c0_15, %c0_16] : memref<8x32xf32, #tpu.memory_space<vmem>>, vector<8x32xf32>
      %c0_17 = arith.constant 0 : index
      %c0_18 = arith.constant 0 : index
      %26 = vector.load %arg7[%c0_17, %c0_18] : memref<8x32xf32, #tpu.memory_space<vmem>>, vector<8x32xf32>
      %27 = vector.extract_strided_slice %25 {offsets = [0, 0], sizes = [8, 16], strides = [1, 1]} : vector<8x32xf32> to vector<8x16xf32>
      %28 = arith.subf %24, %27 : vector<8x16xf32>
      %29 = vector.extract_strided_slice %26 {offsets = [0, 0], sizes = [8, 16], strides = [1, 1]} : vector<8x32xf32> to vector<8x16xf32>
      %30 = arith.divf %28, %29 : vector<8x16xf32>
      %31 = vector.extract_strided_slice %25 {offsets = [0, 16], sizes = [8, 16], strides = [1, 1]} : vector<8x32xf32> to vector<8x16xf32>
      %32 = arith.subf %24, %31 : vector<8x16xf32>
      %33 = vector.extract_strided_slice %26 {offsets = [0, 16], sizes = [8, 16], strides = [1, 1]} : vector<8x32xf32> to vector<8x16xf32>
      %34 = arith.divf %32, %33 : vector<8x16xf32>
      %cst_19 = arith.constant -5.000000e-01 : f32
      %35 = vector.broadcast %cst_19 : f32 to vector<8x16xf32>
      %36 = arith.mulf %35, %30 : vector<8x16xf32>
      %37 = arith.mulf %36, %30 : vector<8x16xf32>
      %38 = vector.extract_strided_slice %26 {offsets = [0, 0], sizes = [8, 16], strides = [1, 1]} : vector<8x32xf32> to vector<8x16xf32>
      %39 = math.log %38 : vector<8x16xf32>
      %40 = arith.subf %37, %39 : vector<8x16xf32>
      %cst_20 = arith.constant 0.918938517 : f32
      %41 = vector.broadcast %cst_20 : f32 to vector<8x16xf32>
      %42 = arith.subf %40, %41 : vector<8x16xf32>
      %cst_21 = arith.constant -5.000000e-01 : f32
      %43 = vector.broadcast %cst_21 : f32 to vector<8x16xf32>
      %44 = arith.mulf %43, %34 : vector<8x16xf32>
      %45 = arith.mulf %44, %34 : vector<8x16xf32>
      %46 = vector.extract_strided_slice %26 {offsets = [0, 16], sizes = [8, 16], strides = [1, 1]} : vector<8x32xf32> to vector<8x16xf32>
      %47 = math.log %46 : vector<8x16xf32>
      %48 = arith.subf %45, %47 : vector<8x16xf32>
      %cst_22 = arith.constant 0.918938517 : f32
      %49 = vector.broadcast %cst_22 : f32 to vector<8x16xf32>
      %50 = arith.subf %48, %49 : vector<8x16xf32>
      %51 = vector.extract_strided_slice %42 {offsets = [0, 0], sizes = [8, 8], strides = [1, 1]} : vector<8x16xf32> to vector<8x8xf32>
      %cst_23 = arith.constant dense<0.000000e+00> : vector<8xf32>
      %52 = vector.multi_reduction <add>, %51, %cst_23 [1] : vector<8x8xf32> to vector<8xf32>
      %53 = vector.shape_cast %52 : vector<8xf32> to vector<8x1xf32>
      %54 = vector.extract_strided_slice %42 {offsets = [0, 8], sizes = [8, 8], strides = [1, 1]} : vector<8x16xf32> to vector<8x8xf32>
      %cst_24 = arith.constant dense<0.000000e+00> : vector<8xf32>
      %55 = vector.multi_reduction <add>, %54, %cst_24 [1] : vector<8x8xf32> to vector<8xf32>
      %56 = vector.shape_cast %55 : vector<8xf32> to vector<8x1xf32>
      %57 = vector.extract_strided_slice %50 {offsets = [0, 0], sizes = [8, 8], strides = [1, 1]} : vector<8x16xf32> to vector<8x8xf32>
      %cst_25 = arith.constant dense<0.000000e+00> : vector<8xf32>
      %58 = vector.multi_reduction <add>, %57, %cst_25 [1] : vector<8x8xf32> to vector<8xf32>
      %59 = vector.shape_cast %58 : vector<8xf32> to vector<8x1xf32>
      %60 = vector.extract_strided_slice %50 {offsets = [0, 8], sizes = [8, 8], strides = [1, 1]} : vector<8x16xf32> to vector<8x8xf32>
      %cst_26 = arith.constant dense<0.000000e+00> : vector<8xf32>
      %61 = vector.multi_reduction <add>, %60, %cst_26 [1] : vector<8x8xf32> to vector<8xf32>
      %62 = vector.shape_cast %61 : vector<8xf32> to vector<8x1xf32>
      %63 = vector.extract_strided_slice %24 {offsets = [0, 0], sizes = [8, 8], strides = [1, 1]} : vector<8x16xf32> to vector<8x8xf32>
      %64 = vector.extract_strided_slice %24 {offsets = [0, 8], sizes = [8, 8], strides = [1, 1]} : vector<8x16xf32> to vector<8x8xf32>
      %c0_27 = arith.constant 0 : index
      %c0_28 = arith.constant 0 : index
      %65 = vector.load %arg8[%c0_27, %c0_28] : memref<8x8xf32, #tpu.memory_space<vmem>>, vector<8x8xf32>
      %66 = vector.extract_strided_slice %65 {offsets = [0, 0], sizes = [8, 1], strides = [1, 1]} : vector<8x8xf32> to vector<8x1xf32>
      %67 = vector.extract_strided_slice %65 {offsets = [0, 1], sizes = [8, 1], strides = [1, 1]} : vector<8x8xf32> to vector<8x1xf32>
      %68 = vector.extract_strided_slice %65 {offsets = [0, 2], sizes = [8, 1], strides = [1, 1]} : vector<8x8xf32> to vector<8x1xf32>
      %c0_29 = arith.constant 0 : index
      %c0_30 = arith.constant 0 : index
      %69 = vector.load %arg9[%c0_29, %c0_30] : memref<8x8xf32, #tpu.memory_space<vmem>>, vector<8x8xf32>
      %70 = vector.extract_strided_slice %69 {offsets = [0, 0], sizes = [1, 8], strides = [1, 1]} : vector<8x8xf32> to vector<1x8xf32>
      %71 = vector.extract_strided_slice %69 {offsets = [1, 0], sizes = [1, 8], strides = [1, 1]} : vector<8x8xf32> to vector<1x8xf32>
      %72 = vector.extract_strided_slice %69 {offsets = [2, 0], sizes = [1, 8], strides = [1, 1]} : vector<8x8xf32> to vector<1x8xf32>
      %73 = vector.extract_strided_slice %69 {offsets = [3, 0], sizes = [1, 8], strides = [1, 1]} : vector<8x8xf32> to vector<1x8xf32>
      %74 = vector.extract_strided_slice %69 {offsets = [4, 0], sizes = [1, 8], strides = [1, 1]} : vector<8x8xf32> to vector<1x8xf32>
      %75 = vector.extract_strided_slice %69 {offsets = [5, 0], sizes = [1, 8], strides = [1, 1]} : vector<8x8xf32> to vector<1x8xf32>
      %76 = vector.extract_strided_slice %69 {offsets = [6, 0], sizes = [1, 1], strides = [1, 1]} : vector<8x8xf32> to vector<1x1xf32>
      %77 = vector.extract_strided_slice %69 {offsets = [6, 1], sizes = [1, 1], strides = [1, 1]} : vector<8x8xf32> to vector<1x1xf32>
      %cst_31 = arith.constant 0.000000e+00 : f32
      %78 = vector.broadcast %cst_31 : f32 to vector<8x1xf32>
      %79 = arith.minimumf %68, %78 : vector<8x1xf32>
      %80 = math.absf %68 : vector<8x1xf32>
      %cst_32 = arith.constant 0.000000e+00 : f32
      %81 = vector.broadcast %cst_32 : f32 to vector<8x1xf32>
      %82 = arith.subf %81, %80 : vector<8x1xf32>
      %83 = math.exp %82 : vector<8x1xf32>
      %cst_33 = arith.constant 1.000000e+00 : f32
      %84 = vector.broadcast %cst_33 : f32 to vector<8x1xf32>
      %85 = arith.addf %84, %83 : vector<8x1xf32>
      %86 = math.log %85 : vector<8x1xf32>
      %87 = arith.subf %79, %86 : vector<8x1xf32>
      %88 = arith.mulf %66, %87 : vector<8x1xf32>
      %cst_34 = arith.constant 1.000000e+00 : f32
      %89 = vector.broadcast %cst_34 : f32 to vector<8x1xf32>
      %90 = arith.subf %89, %66 : vector<8x1xf32>
      %cst_35 = arith.constant 0.000000e+00 : f32
      %91 = vector.broadcast %cst_35 : f32 to vector<8x1xf32>
      %92 = arith.subf %91, %68 : vector<8x1xf32>
      %cst_36 = arith.constant 0.000000e+00 : f32
      %93 = vector.broadcast %cst_36 : f32 to vector<8x1xf32>
      %94 = arith.minimumf %92, %93 : vector<8x1xf32>
      %95 = math.absf %92 : vector<8x1xf32>
      %cst_37 = arith.constant 0.000000e+00 : f32
      %96 = vector.broadcast %cst_37 : f32 to vector<8x1xf32>
      %97 = arith.subf %96, %95 : vector<8x1xf32>
      %98 = math.exp %97 : vector<8x1xf32>
      %cst_38 = arith.constant 1.000000e+00 : f32
      %99 = vector.broadcast %cst_38 : f32 to vector<8x1xf32>
      %100 = arith.addf %99, %98 : vector<8x1xf32>
      %101 = math.log %100 : vector<8x1xf32>
      %102 = arith.subf %94, %101 : vector<8x1xf32>
      %103 = arith.mulf %90, %102 : vector<8x1xf32>
      %104 = arith.addf %88, %103 : vector<8x1xf32>
      %105 = arith.subf %59, %53 : vector<8x1xf32>
      %106 = arith.subf %62, %56 : vector<8x1xf32>
      %cst_39 = arith.constant -1.000000e+00 : f32
      %107 = vector.broadcast %cst_39 : f32 to vector<8x1xf32>
      %108 = arith.mulf %107, %23 : vector<8x1xf32>
      %cst_40 = arith.constant 1.000000e+00 : f32
      %109 = vector.broadcast %cst_40 : f32 to vector<8x1xf32>
      %110 = arith.mulf %109, %105 : vector<8x1xf32>
      %111 = arith.addf %108, %110 : vector<8x1xf32>
      %cst_41 = arith.constant 1.000000e+00 : f32
      %112 = vector.broadcast %cst_41 : f32 to vector<8x1xf32>
      %113 = arith.mulf %112, %106 : vector<8x1xf32>
      %114 = arith.addf %111, %113 : vector<8x1xf32>
      %cst_42 = arith.constant 1.000000e+00 : f32
      %115 = vector.broadcast %cst_42 : f32 to vector<8x1xf32>
      %116 = arith.mulf %115, %104 : vector<8x1xf32>
      %117 = arith.subf %114, %116 : vector<8x1xf32>
      %118 = vector.broadcast %67 : vector<8x1xf32> to vector<8x8xf32>
      %119 = vector.broadcast %73 : vector<1x8xf32> to vector<8x8xf32>
      %120 = arith.mulf %118, %119 : vector<8x8xf32>
      %cst_43 = arith.constant 1.000000e+00 : f32
      %121 = vector.broadcast %cst_43 : f32 to vector<8x1xf32>
      %122 = arith.subf %121, %67 : vector<8x1xf32>
      %123 = vector.broadcast %122 : vector<8x1xf32> to vector<8x8xf32>
      %124 = vector.broadcast %72 : vector<1x8xf32> to vector<8x8xf32>
      %125 = arith.mulf %123, %124 : vector<8x8xf32>
      %126 = arith.addf %120, %125 : vector<8x8xf32>
      %127 = arith.addf %64, %126 : vector<8x8xf32>
      %128 = vector.broadcast %66 : vector<8x1xf32> to vector<8x8xf32>
      %129 = vector.broadcast %71 : vector<1x8xf32> to vector<8x8xf32>
      %130 = arith.mulf %128, %129 : vector<8x8xf32>
      %cst_44 = arith.constant 1.000000e+00 : f32
      %131 = vector.broadcast %cst_44 : f32 to vector<8x1xf32>
      %132 = arith.subf %131, %66 : vector<8x1xf32>
      %133 = vector.broadcast %132 : vector<8x1xf32> to vector<8x8xf32>
      %134 = vector.broadcast %70 : vector<1x8xf32> to vector<8x8xf32>
      %135 = arith.mulf %133, %134 : vector<8x8xf32>
      %136 = arith.addf %130, %135 : vector<8x8xf32>
      %137 = arith.addf %63, %136 : vector<8x8xf32>
      %138 = vector.broadcast %74 : vector<1x8xf32> to vector<8x8xf32>
      %139 = arith.mulf %127, %138 : vector<8x8xf32>
      %cst_45 = arith.constant dense<0.000000e+00> : vector<8xf32>
      %140 = vector.multi_reduction <add>, %139, %cst_45 [1] : vector<8x8xf32> to vector<8xf32>
      %141 = vector.shape_cast %140 : vector<8xf32> to vector<8x1xf32>
      %142 = vector.broadcast %76 : vector<1x1xf32> to vector<8x1xf32>
      %143 = arith.addf %141, %142 : vector<8x1xf32>
      %cst_46 = arith.constant 0.000000e+00 : f32
      %144 = vector.broadcast %cst_46 : f32 to vector<8x1xf32>
      %145 = arith.minimumf %143, %144 : vector<8x1xf32>
      %146 = math.absf %143 : vector<8x1xf32>
      %cst_47 = arith.constant 0.000000e+00 : f32
      %147 = vector.broadcast %cst_47 : f32 to vector<8x1xf32>
      %148 = arith.subf %147, %146 : vector<8x1xf32>
      %149 = math.exp %148 : vector<8x1xf32>
      %cst_48 = arith.constant 1.000000e+00 : f32
      %150 = vector.broadcast %cst_48 : f32 to vector<8x1xf32>
      %151 = arith.addf %150, %149 : vector<8x1xf32>
      %152 = math.log %151 : vector<8x1xf32>
      %153 = arith.subf %145, %152 : vector<8x1xf32>
      %154 = arith.mulf %66, %153 : vector<8x1xf32>
      %cst_49 = arith.constant 1.000000e+00 : f32
      %155 = vector.broadcast %cst_49 : f32 to vector<8x1xf32>
      %156 = arith.subf %155, %66 : vector<8x1xf32>
      %cst_50 = arith.constant 0.000000e+00 : f32
      %157 = vector.broadcast %cst_50 : f32 to vector<8x1xf32>
      %158 = arith.subf %157, %143 : vector<8x1xf32>
      %cst_51 = arith.constant 0.000000e+00 : f32
      %159 = vector.broadcast %cst_51 : f32 to vector<8x1xf32>
      %160 = arith.minimumf %158, %159 : vector<8x1xf32>
      %161 = math.absf %158 : vector<8x1xf32>
      %cst_52 = arith.constant 0.000000e+00 : f32
      %162 = vector.broadcast %cst_52 : f32 to vector<8x1xf32>
      %163 = arith.subf %162, %161 : vector<8x1xf32>
      %164 = math.exp %163 : vector<8x1xf32>
      %cst_53 = arith.constant 1.000000e+00 : f32
      %165 = vector.broadcast %cst_53 : f32 to vector<8x1xf32>
      %166 = arith.addf %165, %164 : vector<8x1xf32>
      %167 = math.log %166 : vector<8x1xf32>
      %168 = arith.subf %160, %167 : vector<8x1xf32>
      %169 = arith.mulf %156, %168 : vector<8x1xf32>
      %170 = arith.addf %154, %169 : vector<8x1xf32>
      %171 = vector.broadcast %75 : vector<1x8xf32> to vector<8x8xf32>
      %172 = arith.mulf %137, %171 : vector<8x8xf32>
      %cst_54 = arith.constant dense<0.000000e+00> : vector<8xf32>
      %173 = vector.multi_reduction <add>, %172, %cst_54 [1] : vector<8x8xf32> to vector<8xf32>
      %174 = vector.shape_cast %173 : vector<8xf32> to vector<8x1xf32>
      %175 = vector.broadcast %77 : vector<1x1xf32> to vector<8x1xf32>
      %176 = arith.addf %174, %175 : vector<8x1xf32>
      %cst_55 = arith.constant 0.000000e+00 : f32
      %177 = vector.broadcast %cst_55 : f32 to vector<8x1xf32>
      %178 = arith.minimumf %176, %177 : vector<8x1xf32>
      %179 = math.absf %176 : vector<8x1xf32>
      %cst_56 = arith.constant 0.000000e+00 : f32
      %180 = vector.broadcast %cst_56 : f32 to vector<8x1xf32>
      %181 = arith.subf %180, %179 : vector<8x1xf32>
      %182 = math.exp %181 : vector<8x1xf32>
      %cst_57 = arith.constant 1.000000e+00 : f32
      %183 = vector.broadcast %cst_57 : f32 to vector<8x1xf32>
      %184 = arith.addf %183, %182 : vector<8x1xf32>
      %185 = math.log %184 : vector<8x1xf32>
      %186 = arith.subf %178, %185 : vector<8x1xf32>
      %187 = arith.mulf %67, %186 : vector<8x1xf32>
      %cst_58 = arith.constant 1.000000e+00 : f32
      %188 = vector.broadcast %cst_58 : f32 to vector<8x1xf32>
      %189 = arith.subf %188, %67 : vector<8x1xf32>
      %cst_59 = arith.constant 0.000000e+00 : f32
      %190 = vector.broadcast %cst_59 : f32 to vector<8x1xf32>
      %191 = arith.subf %190, %176 : vector<8x1xf32>
      %cst_60 = arith.constant 0.000000e+00 : f32
      %192 = vector.broadcast %cst_60 : f32 to vector<8x1xf32>
      %193 = arith.minimumf %191, %192 : vector<8x1xf32>
      %194 = math.absf %191 : vector<8x1xf32>
      %cst_61 = arith.constant 0.000000e+00 : f32
      %195 = vector.broadcast %cst_61 : f32 to vector<8x1xf32>
      %196 = arith.subf %195, %194 : vector<8x1xf32>
      %197 = math.exp %196 : vector<8x1xf32>
      %cst_62 = arith.constant 1.000000e+00 : f32
      %198 = vector.broadcast %cst_62 : f32 to vector<8x1xf32>
      %199 = arith.addf %198, %197 : vector<8x1xf32>
      %200 = math.log %199 : vector<8x1xf32>
      %201 = arith.subf %193, %200 : vector<8x1xf32>
      %202 = arith.mulf %189, %201 : vector<8x1xf32>
      %203 = arith.addf %187, %202 : vector<8x1xf32>
      %cst_63 = arith.constant 1.000000e+01 : f32
      %204 = vector.broadcast %cst_63 : f32 to vector<8x1xf32>
      %205 = arith.mulf %204, %170 : vector<8x1xf32>
      %206 = arith.addf %117, %205 : vector<8x1xf32>
      %cst_64 = arith.constant 1.000000e+01 : f32
      %207 = vector.broadcast %cst_64 : f32 to vector<8x1xf32>
      %208 = arith.mulf %207, %203 : vector<8x1xf32>
      %209 = arith.addf %206, %208 : vector<8x1xf32>
      %210 = math.exp %170 : vector<8x1xf32>
      %211 = math.exp %203 : vector<8x1xf32>
      %212 = tpu.concatenate %117, %23, %105, %106, %210, %211, %209, %104, %170, %203 in 1 : vector<8x1xf32>, vector<8x1xf32>, vector<8x1xf32>, vector<8x1xf32>, vector<8x1xf32>, vector<8x1xf32>, vector<8x1xf32>, vector<8x1xf32>, vector<8x1xf32>, vector<8x1xf32> -> vector<8x10xf32>
      %c0_65 = arith.constant 0 : index
      %c0_66 = arith.constant 0 : index
      %213 = vector.load %arg10[%c0_65, %c0_66] : memref<8x10xf32, #tpu.memory_space<vmem>>, vector<8x10xf32>
      tpu.vector_store %arg10[%c0_65, %c0_66], %212 {strides = array<i32>} : memref<8x10xf32, #tpu.memory_space<vmem>>, vector<8x10xf32>,
    } else {
    }
    return
  }
  func.func @transform_0(%arg0: i32, %arg1: i32) -> (i32, i32) {
    %c0_i32 = arith.constant 0 : i32
    return %arg0, %arg1 : i32, i32
  }
  func.func @transform_1(%arg0: i32, %arg1: i32) -> (i32, i32) {
    %c0_i32 = arith.constant 0 : i32
    return %arg0, %arg1 : i32, i32
  }
  func.func @transform_2(%arg0: i32, %arg1: i32) -> (i32, i32) {
    %c0_i32 = arith.constant 0 : i32
    return %arg0, %arg1 : i32, i32
  }
  func.func @transform_3(%arg0: i32, %arg1: i32) -> (i32, i32) {
    %c0_i32 = arith.constant 0 : i32
    %c0_i32_0 = arith.constant 0 : i32
    return %arg0, %c0_i32 : i32, i32
  }
  func.func @transform_4(%arg0: i32, %arg1: i32) -> (i32, i32) {
    %c0_i32 = arith.constant 0 : i32
    %c0_i32_0 = arith.constant 0 : i32
    return %arg0, %c0_i32 : i32, i32
  }
  func.func @transform_5(%arg0: i32, %arg1: i32) -> (i32, i32) {
    %c0_i32 = arith.constant 0 : i32
    %c0_i32_0 = arith.constant 0 : i32
    return %arg0, %c0_i32 : i32, i32
  }
  func.func @transform_6(%arg0: i32, %arg1: i32) -> (i32, i32) {
    %c0_i32 = arith.constant 0 : i32
    %c0_i32_0 = arith.constant 0 : i32
    return %arg0, %c0_i32 : i32, i32
  }
  func.func @transform_7(%arg0: i32, %arg1: i32) -> (i32, i32) {
    %c0_i32 = arith.constant 0 : i32
    %c0_i32_0 = arith.constant 0 : i32
    %c0_i32_1 = arith.constant 0 : i32
    return %c0_i32, %c0_i32_0 : i32, i32
  }
  func.func @transform_8(%arg0: i32, %arg1: i32) -> (i32, i32) {
    %c0_i32 = arith.constant 0 : i32
    %c0_i32_0 = arith.constant 0 : i32
    return %arg0, %c0_i32 : i32, i32
  }
}

</mosaic_0001>

<bundles_post_ra>
// kernel: tpu_custom_call.1
= control target key start
LH: loop header
LB: loop body
LE: loop exit
PB: predicated region body
PF: predicated region fallthrough
CT: control target
= control target key end

     0   :  { %s1995_s0 = inlined_call_operand.hbm [shape: f32[16,256], index: 0, kind: input, shape index: {}]   ;;  %s1996_s1 = inlined_call_operand.hbm [shape: f32[16,256], index: 1, kind: input, shape index: {}]   ;;  %s1997_s2 = inlined_call_operand.hbm [shape: f32[16,256], index: 2, kind: input, shape index: {}]   ;;  %s1998_s3 = inlined_call_operand.vmem [shape: f32[16,16], index: 3, kind: input, shape index: {}]   ;;  %s1999_s4 = inlined_call_operand.vmem [shape: f32[16,32], index: 4, kind: input, shape index: {}]   ;;  %s2000_s5 = inlined_call_operand.hbm [shape: f32[16,32], index: 5, kind: input, shape index: {}]   ;;  %s2001_s6 = inlined_call_operand.vmem [shape: f32[16,8], index: 6, kind: input, shape index: {}]   ;;  %s2002_s7 = inlined_call_operand.vmem [shape: f32[8,8], index: 7, kind: input, shape index: {}]   ;;  %s2003_s8 = inlined_call_operand.hbm [shape: f32[16,10], index: 8, kind: output, shape index: {}]  }
   0x1   :  { %2018 = sst [smem:[#allocation23_spill]] %s1995_s0 }
   0x2   :  { %2019 = sst [smem:[#allocation24_spill]] %s1996_s1 }
   0x3   :  { %2020 = sst [smem:[#allocation25_spill]] %s1997_s2 }
   0x4   :  { %2021 = sst [smem:[#allocation26_spill]] %s1998_s3 }
   0x5   :  { %2022 = sst [smem:[#allocation27_spill]] %s1999_s4 }
   0x6   :  { %2023 = sst [smem:[#allocation28_spill]] %s2001_s6 }
   0x7   :  { %2024 = sst [smem:[#allocation29_spill]] %s2002_s7 }
   0x8   :  { %2025 = sst [smem:[#allocation30_spill]] %s2003_s8 }
   0x9   :  { %13 = vsyncpa [#allocation4], 0 }
   0xa   :  { %15 = vsyncpa [#allocation4 + $0x1], 0 }
   0xb   :  { %16 = vsyncpa [#allocation7], 0 }
   0xc   :  { %18 = vsyncpa [#allocation7 + $0x1], 0 }
   0xd   :  { %19 = vsyncpa [#allocation10], 0 }
   0xe   :  { %21 = vsyncpa [#allocation10 + $0x1], 0 }
   0xf   :  { %22 = vsyncpa [#allocation5], 0 }
  0x10   :  { %24 = vsyncpa [#allocation5 + $0x1], 0  ;;  %s1526_s27 = smov 0   ;;  %s1528_s28 = smov 0  }
  0x11   :  { %s1530_s29 = smov 0   ;;  %s1532_s30 = smov 0  }
  0x12   :  { %s1534_s9 = smov 0   ;;  %s1536_s10 = smov 0  }
  0x13   :  { %s1538_s11 = smov 0   ;;  %s1540_s12 = smov 0  }
  0x14   :  { %s1542_s13 = smov 0   ;;  %s1544_s14 = smov 0  }
  0x15   :  { %s1546_s15 = smov 0  }
  0x16 LB: > { %2026 = sst [smem:[#allocation16_spill]] %s1447_s11  ;;  %s1580_s16 = sadd.s32 4294967295, %s1463_s15   ;;  %s1463_s15 = sphi %s1546_s15, %s30_s15   ;;  %s1459_s14 = sphi %s1544_s14, %s2083_s14   ;;  %s1455_s13 = sphi %s1542_s13, %s2074_s13   ;;  %s1451_s12 = sphi %s1540_s12, %s2082_s12   ;;  %s1447_s11 = sphi %s1538_s11, %s2073_s11   ;;  %s1443_s10 = sphi %s1536_s10, %s2081_s10   ;;  %s1439_s9 = sphi %s1534_s9, %s2080_s9   ;;  %s1435_s30 = sphi %s1532_s30, %s2079_s30   ;;  %s1431_s29 = sphi %s1530_s29, %s2078_s29   ;;  %s1427_s28 = sphi %s1528_s28, %s2077_s28   ;;  %s1423_s27 = sphi %s1526_s27, %s2076_s27  }
  0x17   : > { %2027 = sst [smem:[#allocation17_spill]] %s1451_s12  ;;  %s39_s17 = sadd.s32 1, %s1455_s13 }
  0x18   : > { %2028 = sst [smem:[#allocation18_spill]] %s1455_s13  ;;  %p40_p0 = scmp.ge.s32.totalorder %s39_s17, 2 }
  0x19   : > { %s42_s18 = sadd.s32 1, %s1459_s14  ;;  %s51_s19 = sadd.s32 1, %s1443_s10 }
  0x1a   : > { %p58_p1 = scmp.ne.s32.totalorder %s1443_s10, %s1439_s9  ;;  %s2085_s17 = smov (%p40_p0, %s39_s17), 0 }
  0x1b   : > { %2029 = sst [smem:[#allocation19_spill]] %s2085_s17  ;;  %s2087_s18 = smov (!%p40_p0, %s42_s18), %s1459_s14 }
  0x1c   : > { %s47_s20 = ssub.s32 %s1455_s13, %s2085_s17  ;;  %p2011_p2 = scmp.eq.s32.totalorder %s1463_s15, 0 }
  0x1d   : > { %p44_p3 = scmp.ge.s32.totalorder %s2087_s18, 2  ;;  %p64_p4 = scmp.ne.s32.totalorder %s1439_s9, %s1435_s30 }
  0x1e   : > { %p1596_p5 = por %p2011_p2, %p58_p1  ;;  %p2010_p6 = scmp.eq.s32.totalorder %s1580_s16, 0 }
  0x1f   : > { %s2089_s18 = smov (%p44_p3, %s2087_s18), 0  ;;  %p2009_p8 = scmp.lt.s32.totalorder %s1463_s15, 4 }
  0x20   : > { %2031 = sst [smem:[#allocation20_spill]] %s2089_s18  ;;  %p1605_p7 = por %p2010_p6, %p64_p4 }
  0x21   : > { %s1611_s23 = ssub.s32 %s1459_s14, %s2089_s18  ;;  %s2007_s25 = sand.u32 1, %s1443_s10  }
  0x22   : > { %s2032_s22 = scalar_select %p1605_p7, 1, 0 }
  0x23   : > { %s48_s24 = sor.u32 %s47_s20, %s1611_s23  ;;  %s1619_s26 = sshll.u32 %s2007_s25, 3 }
  0x24   : > { %2033 = sst [smem:[#allocation21_spill]] %s2032_s22  ;;  %p49_p10 = scmp.eq.s32.totalorder %s48_s24, 0 }
  0x25   : > { %s1015_s30 = sshll.u32 %s1459_s14, 1  ;;  %p1630_p11 = pnand %p2009_p8, %p1596_p5 }
  0x26   : > { %s1623_s17 = scalar_select %p49_p10, %s1443_s10, %s51_s19  }
  0x27   : > { %s307_s8 = sadd.s32 %s1455_s13, %s1015_s30  ;;  %s318_s24 = sand.u32 1, %s1463_s15  }
  0x28   : > { %2034 = sst [smem:[#allocation22_spill]] %s1623_s17  ;;  %s1634_s20 = sshll.u32 %s307_s8, 7 }
  0x29   : > { %s2035_s18 = scalar_select %p1630_p11, 1, 0 }
  0x2a   : > { %s2036_s1 = sld [smem:[#allocation24_spill]]  ;;  %s322_s19 = scalar_lea.vmem [#allocation6], %s1619_s26 }
  0x2b   : > { %s331_s21 = sshll.u32 %s322_s19, 4  ;;  %s1648_s30 = scalar_lea.sflag [#allocation7], %s318_s24  ;;  %s1645_s21 = int_to_ptr.vmem [resolvable:$true] %s331_s21 }
  0x2c   : > { %p1654_p1 = pneg %p1630_p11 }
  0x30   : > { %s1641_s25 = scalar_lea.hbm %s2036_s1, %s1634_s20  ;;  %s1218_s19 = scalar_lea.hbm %s2036_s1, 512 }
  0x31   : > { %s1213_s8 = scalar_lea.hbm %s1641_s25, 128  ;;  %p1219_p5 = scmp.lt.u32.totalorder %s1641_s25, %s2036_s1 }
  0x32   : > { %p1214_p0 = scmp.ne.s32.totalorder %s1641_s25, %s1213_s8  ;;  %p1220_p10 = scmp.lt.u32.totalorder %s1218_s19, %s1213_s8 }
  0x33   : > { %p1222_p6 = scmp.lt.u32.totalorder %s1213_s8, %s1641_s25 }
  0x34   : > { %p1216_p3 = pnand %p1654_p1, %p1214_p0  ;;  %p1221_p8 = por %p1220_p10, %p1219_p5 }
  0x36   : > { %p1217_p4 = pneg %p1216_p3  ;;  %p1223_p2 = por %p1222_p6, %p1221_p8 }
  0x38   : > { %p1224_p9 = pnand %p1223_p2, %p1217_p4 }
  0x3a   : > { %1227 = shalt.err (!%p1224_p9)
}
  0x3b   : > { %s1228_s24 = scalar_lea.vmem %s1645_s21, 128  ;;  %s1465_s7 = smov [#allocation6]  }
  0x3c   : > { %p1229_p0 = scmp.ne.s32.totalorder %s1645_s21, %s1228_s24  ;;  %s1233_s11 = sshll.u32 %s1465_s7, 4  ;;  %s1234_s11 = int_to_ptr.vmem [resolvable:$false] %s1233_s11 }
  0x3d   : > { %s1235_s6 = scalar_lea.vmem %s1234_s11, 256  ;;  %p1236_p13 = scmp.lt.s32.totalorder %s1645_s21, %s1234_s11 }
  0x3e   : > { %p1231_p3 = pnand %p1229_p0, %p1654_p1  ;;  %p1237_p7 = scmp.lt.s32.totalorder %s1235_s6, %s1228_s24 }
  0x40   : > { %p1232_p12 = pneg %p1231_p3  ;;  %p1238_p5 = por %p1237_p7, %p1236_p13 }
  0x42   : > { %p1239_p10 = pnand %p1238_p5, %p1232_p12 }
  0x44   : > { %1242 = shalt.err (!%p1239_p10)
}
  0x45   : > { %1060 = dma.hbm_to_vmem [thread:$0]  (!%p1630_p11), %s1641_s25, 128, %s1645_s21, %s1648_s30  }
  0x46   : > { %p2038_p2 = scmp.lt.s32.totalorder %s1463_s15, 5  ;;  %p2039_p6 = scmp.ge.s32.totalorder %s1463_s15, 1 }
  0x47   : > { %s2041_s0 = sld [smem:[#allocation23_spill]]  ;;  %s302_s7 = scalar_lea.vmem [#allocation3], %s1619_s26 }
  0x48   : > { %p1682_p8 = pnand %p2039_p6, %p2038_p2  ;;  %s311_s11 = sshll.u32 %s302_s7, 4  ;;  %s1693_s11 = int_to_ptr.vmem [resolvable:$true] %s311_s11 }
  0x49   : > { %s2042_s2 = sld [smem:[#allocation25_spill]]  ;;  %s2043_s1 = sand.u32 1, %s1443_s10  }
  0x4a   : > { %s2040_s17 = scalar_select %p1682_p8, 1, 0 }
  0x4b   : > { %s299_s4 = scalar_lea.sflag [#allocation4], %s2043_s1 }
  0x4d   : > { %s1690_s24 = scalar_lea.hbm %s2041_s0, %s1634_s20  ;;  %s1248_s12 = scalar_lea.hbm %s2041_s0, 512 }
  0x4e   : > { %s1243_s3 = scalar_lea.hbm %s1690_s24, 128  ;;  %p1249_p13 = scmp.lt.u32.totalorder %s1690_s24, %s2041_s0 }
  0x4f   : > { %s1699_s6 = scalar_lea.hbm %s2042_s2, %s1634_s20  ;;  %p1244_p7 = scmp.ne.s32.totalorder %s1690_s24, %s1243_s3 }
  0x50   : > { %p1250_p4 = scmp.lt.u32.totalorder %s1248_s12, %s1243_s3  ;;  %p1252_p3 = scmp.lt.u32.totalorder %s1243_s3, %s1690_s24 }
  0x51   : > { %p1246_p9 = pnand %p1244_p7, %p1654_p1 }
  0x52   : > { %p1251_p0 = por %p1250_p4, %p1249_p13 }
  0x53   : > { %p1247_p12 = pneg %p1246_p9 }
  0x54   : > { %p1253_p5 = por %p1252_p3, %p1251_p0 }
  0x56   : > { %p1254_p10 = pnand %p1253_p5, %p1247_p12 }
  0x58   : > { %1257 = shalt.err (!%p1254_p10)
}
  0x59   : > { %s1258_s1 = scalar_lea.vmem %s1693_s11, 128  ;;  %s1466_s20 = smov [#allocation3]  }
  0x5a   : > { %p1259_p2 = scmp.ne.s32.totalorder %s1693_s11, %s1258_s1  ;;  %s1263_s25 = sshll.u32 %s1466_s20, 4  ;;  %s1264_s25 = int_to_ptr.vmem [resolvable:$false] %s1263_s25 }
  0x5b   : > { %s1265_s22 = scalar_lea.vmem %s1264_s25, 256  ;;  %p1266_p9 = scmp.lt.s32.totalorder %s1693_s11, %s1264_s25 }
  0x5c   : > { %p1261_p6 = pnand %p1259_p2, %p1654_p1  ;;  %p1267_p8 = scmp.lt.s32.totalorder %s1265_s22, %s1258_s1 }
  0x5e   : > { %p1262_p7 = pneg %p1261_p6  ;;  %p1268_p13 = por %p1267_p8, %p1266_p9 }
  0x60   : > { %p1269_p4 = pnand %p1268_p13, %p1262_p7 }
  0x62   : > { %1272 = shalt.err (!%p1269_p4)
}
  0x63   : > { %1057 = dma.hbm_to_vmem [thread:$0]  (!%p1630_p11), %s1690_s24, 128, %s1693_s11, %s299_s4  }
  0x64   : > { %s342_s3 = scalar_lea.vmem [#allocation8], %s1619_s26  ;;  %s1273_s21 = scalar_lea.hbm %s1699_s6, 128 }
  0x65   : > { %s351_s12 = sshll.u32 %s342_s3, 4  ;;  %p1274_p12 = scmp.ne.s32.totalorder %s1699_s6, %s1273_s21  ;;  %s352_s12 = int_to_ptr.vmem [resolvable:$true] %s351_s12 }
  0x66   : > { %s1278_s7 = scalar_lea.hbm %s2042_s2, 512  ;;  %p1279_p3 = scmp.lt.u32.totalorder %s1699_s6, %s2042_s2 }
  0x67   : > { %p1276_p8 = pnand %p1274_p12, %p1654_p1  ;;  %p1280_p5 = scmp.lt.u32.totalorder %s1278_s7, %s1273_s21 }
  0x68   : > { %p1282_p2 = scmp.lt.u32.totalorder %s1273_s21, %s1699_s6 }
  0x69   : > { %p1277_p0 = pneg %p1276_p8  ;;  %p1281_p10 = por %p1280_p5, %p1279_p3 }
  0x6b   : > { %p1283_p6 = por %p1282_p2, %p1281_p10 }
  0x6d   : > { %p1284_p7 = pnand %p1283_p6, %p1277_p0 }
  0x6f   : > { %1287 = shalt.err (!%p1284_p7)
}
  0x70   : > { %s1288_s4 = scalar_lea.vmem %s352_s12, 128  ;;  %s1467_s26 = smov [#allocation8]  }
  0x71   : > { %p1289_p9 = scmp.ne.s32.totalorder %s352_s12, %s1288_s4  ;;  %s1293_s24 = sshll.u32 %s1467_s26, 4  ;;  %s1294_s24 = int_to_ptr.vmem [resolvable:$false] %s1293_s24 }
  0x72   : > { %s1295_s11 = scalar_lea.vmem %s1294_s24, 256  ;;  %p1296_p12 = scmp.lt.s32.totalorder %s352_s12, %s1294_s24 }
  0x73   : > { %p1291_p13 = pnand %p1289_p9, %p1654_p1  ;;  %p1297_p8 = scmp.lt.s32.totalorder %s1295_s11, %s1288_s4 }
  0x75   : > { %p1292_p4 = pneg %p1291_p13  ;;  %p1298_p11 = por %p1297_p8, %p1296_p12 }
  0x77   : > { %p1299_p3 = pnand %p1298_p11, %p1292_p4 }
  0x79   : > { %1302 = shalt.err (!%p1299_p3)
}
  0x7a   : > { %p2044_p5 = scmp.ne.s32.totalorder %s2035_s18, 0  ;;  %s1011_s13 = sadd.s32 4294967294, %s1463_s15  }
  0x7b   : > { %s185_s25 = sadd.s32 1, %s1431_s29  ;;  %p2045_p11 = scmp.eq.s32.totalorder %s1611_s23, 0 }
  0x7c   : > { %1063 = dma.hbm_to_vmem [thread:$0]  (!%p2044_p5), %s1699_s6, 128, %s352_s12, %s1648_s30  }
  0x7d   : > { %s1748_s18 = scalar_select %p2045_p11, %s1431_s29, %s185_s25  }
  0x7e   : > { %p192_p1 = scmp.ne.s32.totalorder %s1431_s29, %s1427_s28  ;;  %p198_p0 = scmp.ne.s32.totalorder %s1427_s28, %s1423_s27 }
  0x7f   : > { %p269_p10 = scmp.eq.s32.totalorder %s1580_s16, 3  ;;  %p275_p2 = scmp.eq.s32.totalorder %s1011_s13, 3 }
  0x80   : > { %p2046_p6 = scmp.eq.s32.totalorder %s1463_s15, 0  ;;  %p2047_p9 = scmp.eq.s32.totalorder %s1580_s16, 0 }
  0x81   : > { %p1763_p4 = por %p269_p10, %p192_p1  ;;  %p1767_p12 = por %p275_p2, %p198_p0 }
  0x82   : > { %p194_p7 = por %p192_p1, %p2046_p6  ;;  %p1759_p13 = por %p198_p0, %p2047_p9 }
  0x83   : > { %s2049_s3 = scalar_select %p1763_p4, 1, 0 }
  0x84   : > { %s2050_s23 = scalar_select %p1767_p12, 1, 0 }
  0x85   : > { %s372_s30 = sand.u32 1, %s1431_s29   ;;  %s1024_s6 = sshll.u32 %s1459_s14, 7 }
  0x86   : > { %s1023_s12 = sshll.u32 %s372_s30, 3  ;;  %s1776_s19 = scalar_lea.hbm %s2000_s5, %s1024_s6 }
  0x87   : > { %s376_s7 = scalar_lea.vmem [#allocation9], %s1023_s12  ;;  %p2051_p8 = scmp.lt.s32.totalorder %s1463_s15, 4 }
  0x88   : > { %s383_s1 = sshll.u32 %s376_s7, 4  ;;  %s373_s4 = scalar_lea.sflag [#allocation10], %s372_s30  ;;  %s1784_s1 = int_to_ptr.vmem [resolvable:$true] %s383_s1 }
  0x89   : > { %p1780_p3 = pnand %p2051_p8, %p194_p7  ;;  %s1303_s26 = scalar_lea.hbm %s1776_s19, 128 }
  0x8a   : > { %p1304_p5 = scmp.ne.s32.totalorder %s1776_s19, %s1303_s26  ;;  %s1308_s13 = scalar_lea.hbm %s2000_s5, 256 }
  0x8b   : > { %p1305_p11 = pneg %p1780_p3  ;;  %p1309_p10 = scmp.lt.u32.totalorder %s1776_s19, %s2000_s5 }
  0x8c   : > { %p1310_p2 = scmp.lt.u32.totalorder %s1308_s13, %s1303_s26  ;;  %p1312_p7 = scmp.lt.u32.totalorder %s1303_s26, %s1776_s19 }
  0x8d   : > { %p1306_p1 = pnand %p1305_p11, %p1304_p5 }
  0x8e   : > { %p1311_p6 = por %p1310_p2, %p1309_p10 }
  0x8f   : > { %p1307_p0 = pneg %p1306_p1 }
  0x90   : > { %p1313_p9 = por %p1312_p7, %p1311_p6 }
  0x92   : > { %p1314_p8 = pnand %p1313_p9, %p1307_p0 }
  0x94   : > { %1317 = shalt.err (!%p1314_p8)
}
  0x95   : > { %s1318_s30 = scalar_lea.vmem %s1784_s1, 128  ;;  %s1468_s12 = smov [#allocation9]  }
  0x96   : > { %p1319_p5 = scmp.ne.s32.totalorder %s1784_s1, %s1318_s30  ;;  %s1323_s21 = sshll.u32 %s1468_s12, 4  ;;  %s1324_s21 = int_to_ptr.vmem [resolvable:$false] %s1323_s21 }
  0x97   : > { %s1325_s8 = scalar_lea.vmem %s1324_s21, 256  ;;  %p1326_p4 = scmp.lt.s32.totalorder %s1784_s1, %s1324_s21 }
  0x98   : > { %p1321_p1 = pnand %p1319_p5, %p1305_p11  ;;  %p1327_p10 = scmp.lt.s32.totalorder %s1325_s8, %s1318_s30 }
  0x9a   : > { %p1322_p12 = pneg %p1321_p1  ;;  %p1328_p2 = por %p1327_p10, %p1326_p4 }
  0x9c   : > { %p1329_p6 = pnand %p1328_p2, %p1322_p12 }
  0x9e   : > { %1332 = shalt.err (!%p1329_p6)
}
  0x9f   : > { %1066 = dma.hbm_to_vmem [thread:$0]  (!%p1780_p3), %s1776_s19, 128, %s1784_s1, %s373_s4  }
  0xa0   : > { %p2053_p0 = scmp.ne.s32.totalorder %s2040_s17, 0 }
  0xa1   : > { %s2054_s7 = sld [smem:[#allocation21_spill]] (!%p2053_p0)  ;;  %s401_s26 = sand.u32 (!%p2053_p0), 1, %s1439_s9  }
  0xa2   : > { %399 = sbr.rel (%p2053_p0) target bundleno = 1085 (0x43d), region = 52  ;;  %s1026_s24 = sshll.u32 (!%p2053_p0), %s401_s26, 3 }
  0xa3   : > { %s402_s11 = scalar_lea.sflag (!%p2053_p0), [#allocation4], %s401_s26  ;;  %s405_s13 = scalar_lea.vmem (!%p2053_p0), [#allocation3], %s1026_s24 }
  0xa7   : > { %p2055_p11 = scmp.ne.s32.totalorder (!%p2053_p0), %s2054_s7, 0 }
  0xa9   : > { %1406 = dma.done.wait (%p2055_p11), %s402_s11, 128  }
  0xaa   : > { %1408 = vsyncadd (%p2055_p11), %s402_s11, 4294967168  ;;  %s410_s20 = sand.u32 1, %s1580_s16   ;;  %s414_s6 = scalar_lea.vmem [#allocation6], %s1026_s24 }
  0xab   : > { %s411_s25 = scalar_lea.sflag [#allocation7], %s410_s20 }
  0xac   : > { %1410 = dma.done.wait (%p2055_p11), %s411_s25, 256  }
  0xad   : > { %1412 = vsyncadd (%p2055_p11), %s411_s25, 4294967040  ;;  %s1824_s17 = sand.u32 1, %s1427_s28   ;;  %s423_s1 = scalar_lea.vmem [#allocation8], %s1026_s24 }
  0xae   : > { %s1029_s19 = sshll.u32 %s1824_s17, 3  ;;  %s429_s4 = scalar_lea.sflag [#allocation10], %s1824_s17 }
  0xaf   : > { %s1828_s30 = scalar_lea.vmem [#allocation9], %s1029_s19 }
  0xb0   : > { %1414 = dma.done.wait (%p1759_p13), %s429_s4, 128  }
  0xb1   : > { %1416 = vsyncadd (%p1759_p13), %s429_s4, 4294967168  ;;  %s2056_s16 = sld [smem:[#allocation17_spill]]  ;;  %s2057_s7 = sld [smem:[#allocation26_spill]]  ;;  %v506_v0 = vld [vmem:[%s423_s1] sm:$0xff]  ;;  %v505_v2 = vld [vmem:[%s414_s6] sm:$0xff] }
  0xb2   : > { %s2058_s20 = sld [smem:[#allocation27_spill]]  ;;  %s2059_s4 = sld [smem:[#allocation28_spill]]  ;;  %1172 = vrcp.f32 %v506_v0  ;;  %v504_v1 = vld [vmem:[%s405_s13] sm:$0xff] }
  0xb3   : > { %1174 = vlog2.f32 %v506_v0  ;;  %v507_v3 = vsub.f32 %v504_v1, %v505_v2  ;;  %s2060_s0 = sld [smem:[#allocation16_spill]] }
  0xb7   : > { %p492_p4 = scmp.lt.s32.totalorder %s2056_s16, 1 }
  0xb9   : > { %s2091_s16 = smov (!%p492_p4, %s2056_s16), 1  ;;  %p1035_p13 = scmp.ne.s32.totalorder %s2060_s0, 0 }
  0xba   : > { %s1836_s12 = sshll.u32 %s2091_s16, 3  ;;  %s1850_s16 = scalar_lea.vmem [#allocation11], %s1029_s19  ;;  %vm522_vm0 = vcmask (!%p1035_p13), 7168  }
  0xbb   : > { %s495_s26 = scalar_lea.vmem %s2057_s7, %s1836_s12  ;;  %s499_s25 = scalar_lea.vmem %s2058_s20, %s1836_s12 }
  0xbc   : > { %s503_s2 = scalar_lea.vmem %s2059_s4, %s1836_s12  ;;  %v1173_v4 = vpop.eup %1172 }
  0xbd   : > { %v1175_v5 = vpop.eup %1174  ;;  %v509_v6 = vmul.f32 %v1173_v4, %v507_v3 }
  0xbe   : > { %v513_v8 = vmul.f32 0.6931472, %v1175_v5 }
  0xbf   : > { %v510_v7 = vmul.f32 -0.5, %v509_v6 }
  0xc1   : > { %v511_v9 = vmul.f32 %v510_v7, %v509_v6 }
  0xc3   : > { %v514_v10 = vsub.f32 %v511_v9, %v513_v8 }
  0xc5   : > { %v1034_v11 = vadd.f32 -0.9189385, %v514_v10 }
  0xc7   : > { %516 = vadd.xlane.f32.xlu0 %v1034_v11 }
 0x14e   : > { %521 = sbr.rel (%p1035_p13) target bundleno = 342 (0x156), region = 72 }
 0x154   : > { %v517_v12 = vpop.xlane.xlu0 %516 }
 0x155   : > { %523 = vst.msk [vmem:[#allocation2] sm:$0xff] %vm522_vm0, %v517_v12 }
 0x156 PF: > { %s2061_s13 = sld [smem:[#allocation16_spill]] }
 0x15c   : > { %p1036_p12 = scmp.eq.s32.totalorder %s2061_s13, 0 }
 0x15d   : > { %v528_v13 = vld [vmem:[#allocation2] sm:$0xff] (!%p1036_p12)  ;;  %vm530_vm1 = vcmask (!%p1036_p12), 7168  }
 0x15e   : > { %527 = sbr.rel (%p1036_p12) target bundleno = 357 (0x165), region = 76  ;;  %v529_v14 = vadd.f32 (!%p1036_p12), %v528_v13, %v517_v12 }
 0x160   : > { %531 = vst.msk [vmem:[#allocation2] sm:$0xff] (!%p1036_p12), %vm530_vm1, %v529_v14 }
 0x165 PF: > { %s2062_s6 = sld [smem:[#allocation16_spill]] }
 0x16b   : > { %p1037_p3 = scmp.ne.s32.totalorder %s2062_s6, 1 }
 0x16c   : > { %v1860_v15 = vld [vmem:[%s503_s2] sm:$0xff] (!%p1037_p3)  ;;  %v1469_v16 = vmov (!%p1037_p3), 1   ;;  %v1470_v17 = vmov (!%p1037_p3), 0   ;;  %s1471_s24 = smov (!%p1037_p3), 112   ;;  %v633_v20 = vlaneseq (!%p1037_p3)  ;;  %s2065_s22 = sld [smem:[#allocation29_spill]] (!%p1037_p3)  ;;  %vm568_vm2 = vcmask (!%p1037_p3), 64512  }
 0x16d   : > { %535 = sbr.rel (%p1037_p3) target bundleno = 1058 (0x422), region = 80  ;;  %1176 = vset.pattern.permute.xlu0 (!%p1037_p3), %v1469_v16  ;;  %1177 = vset.pattern.permute.xlu1 (!%p1037_p3), %v1470_v17  ;;  %v1864_v18 = vsub.f32 (!%p1037_p3), 1.0, %v1860_v15  ;;  %v538_v19 = vld [vmem:[%s499_s25] sm:$0xff] (!%p1037_p3)  ;;  %s1472_s25 = smov (!%p1037_p3), 8   ;;  %vm788_vm3 = vcmask (!%p1037_p3), 7168   ;;  %vm790_vm4 = vcmask (!%p1037_p3), 15360  }
 0x16e   : > { %630 = vperm.xlu0 (!%p1037_p3), %1176, %v1860_v15   ;;  %655 = vperm.xlu1 (!%p1037_p3), %1177, %v1860_v15   ;;  %v1874_v21 = vshrl.u32 (!%p1037_p3), %v633_v20, 7  ;;  %v539_v28 = vld [vmem:[%s1828_s30] sm:$0xff] (!%p1037_p3)  ;;  %s1473_s12 = smov (!%p1037_p3), 120   ;;  %s1475_s13 = smov (!%p1037_p3), 1   ;;  %vm792_vm5 = vcmask (!%p1037_p3), 23552   ;;  %vm794_vm6 = vcmask (!%p1037_p3), 31744  }
 0x16f   : > { %1179 = vlog2.f32 (!%p1037_p3), %v539_v28  ;;  %v537_v41 = vld [vmem:[%s495_s26] sm:$0xff] (!%p1037_p3)  ;;  %s1474_s26 = smov (!%p1037_p3), 126   ;;  %s1476_s6 = smov (!%p1037_p3), 4   ;;  %vm796_vm7 = vcmask (!%p1037_p3), 39936   ;;  %vm798_vm8 = vcmask (!%p1037_p3), 48128   ;;  %vm800_vm9 = vcmask (!%p1037_p3), 56320  }
 0x170   : > { %v635_v22 = vsub.s32 (!%p1037_p3), 3, %v1874_v21  ;;  %v645_v23 = vsub.s32 (!%p1037_p3), 2, %v1874_v21  ;;  %v676_v32 = vsub.s32 (!%p1037_p3), 4, %v1874_v21  ;;  %1181 = vrcp.f32 (!%p1037_p3), %v539_v28  ;;  %s1477_s1 = smov (!%p1037_p3), 127   ;;  %s1478_s19 = smov (!%p1037_p3), 7  }
 0x171   : > { %v660_v37 = vsub.s32 (!%p1037_p3), 1, %v1874_v21  ;;  %v669_v38 = vsub.s32 (!%p1037_p3), 0, %v1874_v21  ;;  %v540_v44 = vsub.f32 (!%p1037_p3), %v537_v41, %v538_v19  ;;  %v719_v50 = vsub.s32 (!%p1037_p3), 5, %v1874_v21  ;;  %s1479_s21 = smov (!%p1037_p3), 6  }
 0x172   : > { %640 = vperm.xlu0 (!%p1037_p3), %1176, %v1864_v18   ;;  %v1881_v24 = vld [vmem:[%s2065_s22] sm:$0xff] (!%p1037_p3)  ;;  %v692_v11 = vsub.s32 (!%p1037_p3), 6, %v1874_v21  ;;  %vm803_vm10 = vcmask (!%p1037_p3), 72704   ;;  %vm805_vm11 = vcmask (!%p1037_p3), 80896  }
 0x173   : > { %v636_v26 = vrot.slane (!%p1037_p3), %v1881_v24, %v635_v22  ;;  %v646_v27 = vrot.slane (!%p1037_p3), %v1881_v24, %v645_v23  ;;  %v677_v34 = vrot.slane (!%p1037_p3), %v1881_v24, %v676_v32  ;;  %v661_v39 = vrot.slane (!%p1037_p3), %v1881_v24, %v660_v37 }
 0x174   : > { %v670_v40 = vrot.slane %v1881_v24, %v669_v38  ;;  %v720_v53 = vrot.slane %v1881_v24, %v719_v50  ;;  %v1906_v12 = vrot.slane %v1881_v24, %v692_v11 }
 0x176   : > { %1178 = vset.pattern.permute.xlu0 %v1470_v17 }
 0x177   : > { %664 = vperm.xlu0 %1178, %v1864_v18  }
 0x179   : > { %v1180_v35 = vpop.eup %1179 }
 0x17a   : > { %v557_v36 = vmul.f32 0.6931472, %v1180_v35  ;;  %v1182_v45 = vpop.eup %1181 }
 0x17b   : > { %544 = vrot.lane.b32.xlu0 %v538_v19, %s1471_s24  ;;  %v542_v48 = vmul.f32 %v1182_v45, %v540_v44 }
 0x17d   : > { %v554_v51 = vmul.f32 -0.5, %v542_v48 }
 0x17f   : > { %v555_v54 = vmul.f32 %v554_v51, %v542_v48 }
 0x181   : > { %v558_v56 = vsub.f32 %v555_v54, %v557_v36 }
 0x183   : > { %v1038_v58 = vadd.f32 -0.9189385, %v558_v56  ;;  %v591_v56 = vmin.f32 %v1860_v15, 0.0 }
 0x185   : > { %v569_v59 = vsel %vm568_vm2, %v1038_v58, 0.0 }
 0x1ed   : > { %v631_v25 = vpop.permute.xlu0 %630  ;;  %v656_v42 = vpop.permute.xlu1 %655 }
 0x1ee   : > { %v637_v30 = vmul.f32 %v636_v26, %v631_v25  ;;  %v662_v46 = vmul.f32 %v661_v39, %v656_v42  ;;  %v592_v26 = vand.u32 2147483647, %v1860_v15 }
 0x1f1   : > { %v641_v29 = vpop.permute.xlu0 %640 }
 0x1f2   : > { %v647_v31 = vmul.f32 %v646_v27, %v641_v29  ;;  %v593_v27 = vsub.f32 0.0, %v592_v26 }
 0x1f4   : > { %v648_v33 = vadd.f32 %v647_v31, %v637_v30  ;;  %v594_v29 = vmul.f32 1.442695, %v593_v27  ;;  %v606_v31 = vsub.f32 0.0, %v1860_v15 }
 0x1f6   : > { %650 = vrot.lane.b32.xlu1 %v648_v33, %s1472_s25  ;;  %v665_v43 = vpop.permute.xlu0 %664  ;;  %v608_v32 = vand.u32 2147483647, %v606_v31 }
 0x1f7   : > { %v671_v47 = vmul.f32 %v670_v40, %v665_v43 }
 0x1f8   : > { %v609_v33 = vsub.f32 0.0, %v608_v32 }
 0x1f9   : > { %v672_v49 = vadd.f32 %v671_v47, %v662_v46 }
 0x1fa   : > { %679 = vrot.lane.b32.xlu1 %v677_v34, %s1472_s25  ;;  %v545_v1 = vpop.permute.xlu0 %544  ;;  %v610_v38 = vmul.f32 1.442695, %v609_v33 }
 0x1fb   : > { %v673_v52 = vadd.f32 %v672_v49, %v537_v41  ;;  %v547_v2 = vsub.f32 %v537_v41, %v545_v1 }
 0x1fd   : > { %v721_v55 = vmul.f32 %v720_v53, %v673_v52 }
 0x1fe   : > { %549 = vrot.lane.b32.xlu1 %v539_v28, %s1471_s24 }
 0x1ff   : > { %v722_v57 = vsel %vm568_vm2, %v721_v55, 0.0 }
 0x202   : > { %563 = vrot.lane.b32.xlu1 %v557_v36, %s1471_s24 }
 0x226   : > { %723 = vadd.xlane.f32.xlu1 %v722_v57 }
 0x22a   : > { %570 = vadd.xlane.f32.xlu1 %v569_v59 }
 0x268   : > { %v651_v60 = vpop.permute.xlu1 %650 }
 0x269   : > { %v653_v61 = vadd.f32 %v651_v60, %v537_v41 }
 0x26c   : > { %v680_v62 = vpop.permute.xlu1 %679 }
 0x26d   : > { %v682_v63 = vmul.f32 %v680_v62, %v653_v61  ;;  %v536_v61 = vld [vmem:[#allocation2] sm:$0xff] }
 0x26e   : > { %v624_v26 = vmul.f32 -1.0, %v536_v61 }
 0x26f   : > { %684 = vrot.lane.b32.xlu0 %v682_v63, %s1473_s12 }
 0x270   : > { %v550_v0 = vpop.permute.xlu1 %549 }
 0x271   : > { %1183 = vrcp.f32 %v550_v0  ;;  %v607_v0 = vmin.f32 %v606_v31, 0.0 }
 0x273   : > { %573 = vrot.lane.b32.xlu0 %v1038_v58, %s1473_s12 }
 0x274   : > { %v564_v6 = vpop.permute.xlu1 %563 }
 0x27b   : > { %v1184_v3 = vpop.eup %1183 }
 0x27c   : > { %v553_v4 = vmul.f32 %v1184_v3, %v547_v2 }
 0x27e   : > { %v560_v5 = vmul.f32 -0.5, %v553_v4 }
 0x280   : > { %v561_v7 = vmul.f32 %v560_v5, %v553_v4 }
 0x282   : > { %v566_v8 = vsub.f32 %v561_v7, %v564_v6 }
 0x284   : > { %v1039_v9 = vadd.f32 -0.9189385, %v566_v8 }
 0x286   : > { %583 = vrot.lane.b32.xlu0 %v1039_v9, %s1473_s12  ;;  %v579_v10 = vsel %vm568_vm2, %v1039_v9, 0.0 }
 0x287   : > { %580 = vadd.xlane.f32.xlu1 %v579_v10 }
 0x2b3   : > { %v724_v13 = vpop.xlane.xlu1 %723 }
 0x2b4   : > { %v725_v14 = vadd.f32 %v724_v13, %v1906_v12 }
 0x2b6   : > { %v736_v16 = vsub.f32 0.0, %v725_v14  ;;  %v727_v17 = vand.u32 2147483647, %v725_v14  ;;  %v726_v41 = vmin.f32 %v725_v14, 0.0 }
 0x2b7   : > { %v571_v14 = vpop.xlane.xlu1 %570 }
 0x2b8   : > { %v738_v19 = vand.u32 2147483647, %v736_v16  ;;  %v728_v20 = vsub.f32 0.0, %v727_v17  ;;  %v737_v43 = vmin.f32 %v736_v16, 0.0 }
 0x2ba   : > { %v739_v22 = vsub.f32 0.0, %v738_v19  ;;  %v729_v23 = vmul.f32 1.442695, %v728_v20 }
 0x2bc   : > { %v740_v25 = vmul.f32 1.442695, %v739_v22  ;;  %1185 = vpow2.f32 %v729_v23 }
 0x2be   : > { %1187 = vpow2.f32 %v740_v25 }
 0x2bf   : > { %1189 = vpow2.f32 %v594_v29 }
 0x2c6   : > { %v1186_v28 = vpop.eup %1185 }
 0x2c7   : > { %v731_v24 = vadd.f32 1.0, %v1186_v28 }
 0x2c8   : > { %v1188_v21 = vpop.eup %1187 }
 0x2c9   : > { %v742_v30 = vadd.f32 1.0, %v1188_v21  ;;  %1191 = vlog2.f32 %v731_v24  ;;  %v1190_v34 = vpop.eup %1189 }
 0x2ca   : > { %v596_v40 = vadd.f32 1.0, %v1190_v34 }
 0x2cb   : > { %1193 = vlog2.f32 %v742_v30 }
 0x2cc   : > { %1195 = vpow2.f32 %v610_v38 }
 0x2cd   : > { %1197 = vlog2.f32 %v596_v40 }
 0x2d3   : > { %v1192_v35 = vpop.eup %1191 }
 0x2d4   : > { %v733_v42 = vmul.f32 0.6931472, %v1192_v35 }
 0x2d5   : > { %v1194_v36 = vpop.eup %1193 }
 0x2d6   : > { %v744_v44 = vmul.f32 0.6931472, %v1194_v36  ;;  %v734_v47 = vsub.f32 %v726_v41, %v733_v42  ;;  %v1196_v51 = vpop.eup %1195 }
 0x2d7   : > { %v1198_v53 = vpop.eup %1197  ;;  %v612_v54 = vadd.f32 1.0, %v1196_v51 }
 0x2d8   : > { %v745_v48 = vsub.f32 %v737_v43, %v744_v44  ;;  %v735_v49 = vmul.f32 %v734_v47, %v1860_v15  ;;  %v598_v57 = vmul.f32 0.6931472, %v1198_v53 }
 0x2d9   : > { %1199 = vlog2.f32 %v612_v54 }
 0x2da   : > { %v746_v50 = vmul.f32 %v745_v48, %v1864_v18  ;;  %v599_v60 = vsub.f32 %v591_v56, %v598_v57 }
 0x2dc   : > { %v1915_v52 = vadd.f32 %v746_v50, %v735_v49 }
 0x2de   : > { %v758_v55 = vmul.f32 1.442695, %v1915_v52  ;;  %v750_v3 = vmul.f32 10.0, %v1915_v52 }
 0x2e0   : > { %1201 = vpow2.f32 %v758_v55 }
 0x2e1   : > { %v685_v37 = vpop.permute.xlu0 %684 }
 0x2e2   : > { %v687_v39 = vsel %vm568_vm2, %v685_v37, 0.0 }
 0x2e3   : > { %688 = vadd.xlane.f32.xlu0 %v687_v39  ;;  %v1200_v62 = vpop.eup %1199 }
 0x2e4   : > { %v614_v1 = vmul.f32 0.6931472, %v1200_v62 }
 0x2e5   : > { %v574_v45 = vpop.permute.xlu0 %573 }
 0x2e6   : > { %v576_v46 = vsel %vm568_vm2, %v574_v45, 0.0  ;;  %v615_v2 = vsub.f32 %v607_v0, %v614_v1 }
 0x2e7   : > { %577 = vadd.xlane.f32.xlu0 %v576_v46 }
 0x2ea   : > { %v1202_v63 = vpop.eup %1201 }
 0x2f8   : > { %v584_v58 = vpop.permute.xlu0 %583 }
 0x2f9   : > { %v586_v59 = vsel %vm568_vm2, %v584_v58, 0.0 }
 0x2fa   : > { %587 = vadd.xlane.f32.xlu1 %v586_v59 }
 0x2fd   : > { %601 = vrot.lane.b32.xlu0 %v599_v60, %s1474_s26 }
 0x301   : > { %761 = vrot.lane.b32.xlu0 %v536_v61, %s1475_s13 }
 0x305   : > { %769 = vrot.lane.b32.xlu0 %v1202_v63, %s1476_s6 }
 0x30b   : > { %617 = vrot.lane.b32.xlu1 %v615_v2, %s1474_s26 }
 0x30f   : > { %752 = vrot.lane.b32.xlu1 %v750_v3, %s1477_s1 }
 0x314   : > { %v581_v17 = vpop.xlane.xlu1 %580 }
 0x370   : > { %v689_v4 = vpop.xlane.xlu0 %688 }
 0x371   : > { %v694_v5 = vadd.f32 %v1906_v12, %v689_v4  ;;  %v622_v12 = vsub.f32 %v581_v17, %v571_v14 }
 0x373   : > { %v696_v6 = vand.u32 2147483647, %v694_v5  ;;  %v705_v7 = vsub.f32 0.0, %v694_v5  ;;  %v625_v24 = vadd.f32 %v624_v26, %v622_v12  ;;  %v695_v35 = vmin.f32 %v694_v5, 0.0 }
 0x374   : > { %v578_v19 = vpop.xlane.xlu0 %577 }
 0x375   : > { %v697_v8 = vsub.f32 0.0, %v696_v6  ;;  %v707_v9 = vand.u32 2147483647, %v705_v7  ;;  %v706_v41 = vmin.f32 %v705_v7, 0.0 }
 0x377   : > { %v698_v10 = vmul.f32 1.442695, %v697_v8  ;;  %v708_v11 = vsub.f32 0.0, %v707_v9 }
 0x378   : > { %v602_v27 = vpop.permute.xlu0 %601 }
 0x379   : > { %1203 = vpow2.f32 %v698_v10  ;;  %v709_v13 = vmul.f32 1.442695, %v708_v11  ;;  %v604_v28 = vmul.f32 %v602_v27, %v1860_v15 }
 0x37b   : > { %1205 = vpow2.f32 %v709_v13 }
 0x37c   : > { %v762_v37 = vpop.permute.xlu0 %761 }
 0x383   : > { %v1204_v16 = vpop.eup %1203 }
 0x384   : > { %v700_v20 = vadd.f32 1.0, %v1204_v16 }
 0x385   : > { %v1206_v22 = vpop.eup %1205 }
 0x386   : > { %1207 = vlog2.f32 %v700_v20  ;;  %v711_v23 = vadd.f32 1.0, %v1206_v22 }
 0x387   : > { %v588_v25 = vpop.xlane.xlu1 %587 }
 0x388   : > { %1209 = vlog2.f32 %v711_v23  ;;  %v623_v21 = vsub.f32 %v588_v25, %v578_v19 }
 0x38a   : > { %v626_v31 = vadd.f32 %v625_v24, %v623_v21 }
 0x38b   : > { %v618_v29 = vpop.permute.xlu1 %617 }
 0x38c   : > { %v620_v30 = vmul.f32 %v618_v29, %v1864_v18 }
 0x38e   : > { %v621_v32 = vadd.f32 %v620_v30, %v604_v28 }
 0x38f   : > { %v753_v53 = vpop.permute.xlu1 %752 }
 0x390   : > { %v1208_v33 = vpop.eup %1207  ;;  %v627_v34 = vsub.f32 %v626_v31, %v621_v32  ;;  %777 = vrot.lane.b32.xlu0 %v621_v32, %s1478_s19 }
 0x391   : > { %v702_v36 = vmul.f32 0.6931472, %v1208_v33 }
 0x392   : > { %v1210_v38 = vpop.eup %1209  ;;  %v789_v39 = vsel %vm788_vm3, %v627_v34, %v762_v37 }
 0x393   : > { %v703_v40 = vsub.f32 %v695_v35, %v702_v36  ;;  %v713_v42 = vmul.f32 0.6931472, %v1210_v38  ;;  %v791_v43 = vsel %vm790_vm4, %v789_v39, %v622_v12 }
 0x394   : > { %785 = vrot.lane.b32.xlu0 %v1915_v52, %s1472_s25  ;;  %v793_v44 = vsel %vm792_vm5, %v791_v43, %v623_v21  ;;  %v770_v52 = vpop.permute.xlu0 %769 }
 0x395   : > { %v714_v45 = vsub.f32 %v706_v41, %v713_v42  ;;  %v704_v46 = vmul.f32 %v703_v40, %v1860_v15 }
 0x397   : > { %v715_v47 = vmul.f32 %v714_v45, %v1864_v18 }
 0x399   : > { %v716_v48 = vadd.f32 %v715_v47, %v704_v46 }
 0x39b   : > { %v748_v49 = vmul.f32 10.0, %v716_v48  ;;  %v756_v50 = vmul.f32 1.442695, %v716_v48 }
 0x39d   : > { %1211 = vpow2.f32 %v756_v50  ;;  %v749_v51 = vadd.f32 %v748_v49, %v627_v34 }
 0x39f   : > { %v755_v54 = vadd.f32 %v753_v53, %v749_v51 }
 0x3a1   : > { %773 = vrot.lane.b32.xlu1 %v755_v54, %s1479_s21 }
 0x3a7   : > { %v1212_v55 = vpop.eup %1211 }
 0x3a8   : > { %765 = vrot.lane.b32.xlu1 %v1212_v55, %s1476_s6 }
 0x3ac   : > { %781 = vrot.lane.b32.xlu1 %v716_v48, %s1472_s25 }
 0x402   : > { %v778_v15 = vpop.permute.xlu0 %777 }
 0x406   : > { %v786_v62 = vpop.permute.xlu0 %785 }
 0x413   : > { %v774_v56 = vpop.permute.xlu1 %773 }
 0x41a   : > { %v766_v18 = vpop.permute.xlu1 %765 }
 0x41b   : > { %v795_v57 = vsel %vm794_vm6, %v793_v44, %v766_v18 }
 0x41c   : > { %v797_v58 = vsel %vm796_vm7, %v795_v57, %v770_v52 }
 0x41d   : > { %v799_v59 = vsel %vm798_vm8, %v797_v58, %v774_v56 }
 0x41e   : > { %v801_v60 = vsel %vm800_vm9, %v799_v59, %v778_v15  ;;  %v782_v61 = vpop.permute.xlu1 %781 }
 0x41f   : > { %v802_v63 = vsel %vm568_vm2, %v801_v60, %v782_v61 }
 0x420   : > { %v804_v0 = vsel %vm803_vm10, %v802_v63, %v786_v62 }
 0x421   : > { %806 = vst.msk [vmem:[%s1850_s16] sm:$0xff] %vm805_vm11, %v804_v0 }
 0x422 PF: > { %s2067_s8 = sld [smem:[#allocation17_spill]]  ;;  %s2068_s11 = sld [smem:[#allocation30_spill]] }
 0x423   : > { %s821_s25 = sshll.u32 %s1850_s16, 4  ;;  %s808_s30 = scalar_lea.sflag [#allocation5], %s1824_s17  ;;  %s822_s25 = int_to_ptr.vmem [resolvable:$true] %s821_s25 }
 0x424   : > { %s1333_s4 = scalar_lea.vmem %s822_s25, 128  ;;  %p2070_p9 = scmp.ne.s32.totalorder %s2049_s3, 0 }
 0x425   : > { %p1334_p7 = scmp.ne.s32.totalorder %s822_s25, %s1333_s4  ;;  %s1480_s0 = smov [#allocation11]  }
 0x426   : > { %s1337_s12 = sshll.u32 %s1480_s0, 4  ;;  %s1338_s12 = int_to_ptr.vmem [resolvable:$false] %s1337_s12 }
 0x427   : > { %p1335_p8 = pnand %p1334_p7, %p2070_p9  ;;  %s1339_s26 = scalar_lea.vmem %s1338_s12, 256 }
 0x428   : > { %s1041_s2 = sshll.u32 %s2067_s8, 7  ;;  %s2069_s20 = smov %s2068_s11 }
 0x429   : > { %s1937_s22 = scalar_lea.hbm %s2068_s11, %s1041_s2  ;;  %p1336_p5 = pneg %p1335_p8 }
 0x42a   : > { %p1340_p1 = scmp.lt.s32.totalorder %s822_s25, %s1338_s12  ;;  %p1341_p10 = scmp.lt.s32.totalorder %s1339_s26, %s1333_s4 }
 0x42c   : > { %p1342_p2 = por %p1341_p10, %p1340_p1 }
 0x42e   : > { %p1343_p6 = pnand %p1342_p2, %p1336_p5 }
 0x430   : > { %1346 = shalt.err (!%p1343_p6)
}
 0x431   : > { %s1347_s17 = scalar_lea.hbm %s1937_s22, 128  ;;  %s1351_s6 = scalar_lea.hbm %s2069_s20, 256 }
 0x432   : > { %p1348_p0 = scmp.ne.s32.totalorder %s1937_s22, %s1347_s17  ;;  %p1352_p13 = scmp.lt.u32.totalorder %s1937_s22, %s2069_s20 }
 0x433   : > { %p1353_p12 = scmp.lt.u32.totalorder %s1351_s6, %s1347_s17  ;;  %p1355_p7 = scmp.lt.u32.totalorder %s1347_s17, %s1937_s22 }
 0x434   : > { %p1349_p11 = pnand %p1348_p0, %p2070_p9 }
 0x435   : > { %p1354_p3 = por %p1353_p12, %p1352_p13 }
 0x436   : > { %p1350_p4 = pneg %p1349_p11 }
 0x437   : > { %p1356_p8 = por %p1355_p7, %p1354_p3 }
 0x439   : > { %p1357_p5 = pnand %p1356_p8, %p1350_p4 }
 0x43b   : > { %1360 = shalt.err (!%p1357_p5)
}
 0x43c   : > { %1052 = dma.vmem_to_hbm [thread:$0]  (%p2070_p9), %s822_s25, 128, %s1937_s22, %s808_s30  }
 0x43d PF: > { %p1072_p1 = scmp.ge.s32.totalorder %s1463_s15, 2  ;;  %s833_s21 = sand.u32 1, %s1423_s27  }
 0x43e   : > { %p2071_p10 = scmp.ne.s32.totalorder %s2050_s23, 0  ;;  %s834_s8 = scalar_lea.sflag [#allocation5], %s833_s21 }
 0x440   : > { %p1068_p2 = pnand %p1072_p1, %p2071_p10 }
 0x442   : > { %1418 = dma.done.wait (!%p1068_p2), %s834_s8, 128  }
 0x443   : > { %1420 = vsyncadd (!%p1068_p2), %s834_s8, 4294967168  ;;  %s30_s15 = sadd.s32 1, %s1463_s15   ;;  %s2072_s3 = sld [smem:[#allocation22_spill]] }
 0x444   : > { %p27_p6 = scmp.ge.s32.totalorder %s30_s15, 6   ;;  %s2073_s11 = sld [smem:[#allocation18_spill]] }
 0x445   : > { %s2074_s13 = sld [smem:[#allocation19_spill]]  ;;  %s2075_s2 = sld [smem:[#allocation20_spill]] }
 0x446   : > { %s2076_s27 = smov %s1427_s28  ;;  %s2077_s28 = smov %s1431_s29 }
 0x447   : > { %s2078_s29 = smov %s1748_s18  ;;  %s2079_s30 = smov %s1439_s9 }
 0x448   : > { %s2080_s9 = smov %s1443_s10  ;;  %s2082_s12 = smov %s1459_s14 }
 0x449   : > { %s2081_s10 = smov %s2072_s3  ;;  %29 = sbr.rel (!%p27_p6) target bundleno = 22 (0x16), region = 155 }
 0x44b   : > { %s2083_s14 = smov %s2075_s2 }
 0x450   :  { %839 = vsyncpa [#allocation4], 1 }
 0x451   :  { %841 = vsyncpa [#allocation4 + $0x1], 1 }
 0x452   :  { %842 = vsyncpa [#allocation7], 1 }
 0x453   :  { %844 = vsyncpa [#allocation7 + $0x1], 1 }
 0x454   :  { %845 = vsyncpa [#allocation10], 1 }
 0x455   :  { %847 = vsyncpa [#allocation10 + $0x1], 1 }
 0x456   :  { %848 = vsyncpa [#allocation5], 1 }
 0x457   :  { %850 = vsyncpa [#allocation5 + $0x1], 1 }

</bundles_post_ra>
